<compile_context>
chip_gen: v5e
topology: v5e:2x2
jax: 0.10.0
libtpu: 0.0.40
codegen_flags: <defaults>
</compile_context>

<pallas_src>
import jax
import jax.numpy as jnp
import numpy as np
from jax.experimental import pallas as pl
from jax.experimental.pallas import tpu as pltpu

# Hyper-parameters consistent with the module.
S = 8              # sequence length
E = 32             # emb_length
H = 4              # n_heads
DH = E // H        # dim_head
HID = 64           # hidden
L = 2              # n_encoder
EPS = 1e-5         # nn.LayerNorm default eps
NEG_SLOPE = 0.01   # nn.LeakyReLU default slope

QKV_BLK = 32       # lane width of one head block in the fused QKV weight
QKV_W = H * QKV_BLK  # 128

# ---- packed-parameter blob layout (row offsets; all lane offsets are 0) ----
LAYER_ROWS = 168
R_WQKV = 0      # (32, 128) fused, head-arranged QKV weight (Q cols pre-scaled)
R_BQKV = 32     # (1, 128)
R_BO = 33       # (1, 32)
R_G1 = 34       # (1, 32)
R_BE1 = 35      # (1, 32)
R_B1 = 36       # (1, 64)
R_B2 = 37       # (1, 32)
R_G2 = 38       # (1, 32)
R_BE2 = 39      # (1, 32)
R_WO = 40       # (32, 32)
R_W1 = 72       # (32, 64)
R_W2 = 104      # (64, 32)
R_WC = L * LAYER_ROWS        # (32, 2)
R_BC = R_WC + E              # (1, 2)
TOTAL_ROWS = ((R_BC + 1 + 7) // 8) * 8   # 376

# ---- runtime data blob layout ----
D_X = 0          # rows [0, 8)   : x                       (8, 32)
D_MASK = 8       # rows [8, 40)  : additive attention mask (32, 32)
D_POOL = 40      # row 40        : pooling vector          (1, 8) in lanes 0:8
DATA_ROWS = 48


def encoder_classifier_kernel(d_ref, p_ref, out_ref):
    f32 = jnp.float32
    x = d_ref[D_X:D_X + S, :]                  # (8, 32)
    mask = d_ref[D_MASK:D_MASK + H * S, :]     # (32, 32) additive (0 / -1e9)
    pool = d_ref[D_POOL:D_POOL + 1, 0:S]       # (1, 8) = (1 - pad) / count

    # Constant one-hot gather matrices G[j][S*j + s, s] = 1 (built once, hoisted).
    rows = jax.lax.broadcasted_iota(jnp.int32, (H * S, S), 0)
    cols = jax.lax.broadcasted_iota(jnp.int32, (H * S, S), 1)
    G = [(rows == S * j + cols).astype(f32) for j in range(H)]

    def layernorm(v, g, b):
        mu = jnp.mean(v, axis=-1, keepdims=True)
        d = v - mu
        var = jnp.mean(d * d, axis=-1, keepdims=True)
        return d * jax.lax.rsqrt(var + EPS) * g + b

    def softmax(v):
        m = jnp.max(v, axis=-1, keepdims=True)
        e = jnp.exp(v - m)
        return e * pl.reciprocal(jnp.sum(e, axis=-1, keepdims=True), approx=True)

    for l in range(L):                         # static unroll over encoder blocks
        o = l * LAYER_ROWS

        # ---- Multi_Head_Attention ----
        # fused QKV projection; weight columns are head-block-major:
        #   lanes [32j, 32j+8) = Q (pre-scaled), [+8,+16) = K, [+16,+24) = V, rest 0
        qkv = jnp.dot(x, p_ref[o + R_WQKV:o + R_WQKV + E, :],
                      preferred_element_type=f32) \
              + p_ref[o + R_BQKV:o + R_BQKV + 1, :]                       # (8, 128)

        # head-major relayout (torch's .view(n_heads, -1, dim_head)) via 4
        # constant permutation matmuls:  qkv32[S*j + s, :] = qkv[s, 32j:32j+32]
        qkv32 = jnp.dot(G[0], qkv[:, 0:QKV_BLK], preferred_element_type=f32)
        for j in range(1, H):
            qkv32 = qkv32 + jnp.dot(G[j], qkv[:, QKV_BLK * j:QKV_BLK * (j + 1)],
                                    preferred_element_type=f32)           # (32, 32)
        q32 = qkv32[:, 0:DH]              # already scaled by 1/sqrt(DH)
        k32 = qkv32[:, DH:2 * DH]
        v32 = qkv32[:, 2 * DH:3 * DH]

        # batched attention over all heads: one masked (32, 32) softmax
        sc = jax.lax.dot_general(q32, k32, (((1,), (1,)), ((), ())),
                                 preferred_element_type=f32) + mask
        attn32 = jnp.dot(softmax(sc), v32, preferred_element_type=f32)    # (32, 8)

        # attn.view(-1, H*DH) @ Wo with the inverse reshape folded into the
        # Wo row blocks:  a = sum_j attn32[8j:8j+8, :] @ Wo[8j:8j+8, :]
        a = jnp.dot(attn32[0:S, :], p_ref[o + R_WO:o + R_WO + S, 0:E],
                    preferred_element_type=f32)
        for j in range(1, H):
            a = a + jnp.dot(attn32[S * j:S * (j + 1), :],
                            p_ref[o + R_WO + S * j:o + R_WO + S * (j + 1), 0:E],
                            preferred_element_type=f32)
        a = a + p_ref[o + R_BO:o + R_BO + 1, 0:E] + x
        a = layernorm(a, p_ref[o + R_G1:o + R_G1 + 1, 0:E],
                      p_ref[o + R_BE1:o + R_BE1 + 1, 0:E])

        # ---- Feed_Forward_NN ----
        h = jnp.dot(a, p_ref[o + R_W1:o + R_W1 + E, 0:HID],
                    preferred_element_type=f32) + p_ref[o + R_B1:o + R_B1 + 1, 0:HID]
        h = jnp.where(h >= 0.0, h, NEG_SLOPE * h)            # LeakyReLU
        y = jnp.dot(h, p_ref[o + R_W2:o + R_W2 + HID, 0:E],
                    preferred_element_type=f32) + p_ref[o + R_B2:o + R_B2 + 1, 0:E]
        x = layernorm(y + a, p_ref[o + R_G2:o + R_G2 + 1, 0:E],
                      p_ref[o + R_BE2:o + R_BE2 + 1, 0:E])
        # TODO(synk): nn.Dropout is a no-op in eval mode; not applied here.

    # ---- classifier head: masked mean-pool folded into one (1, S) matvec ----
    pooled = jnp.dot(pool, x, preferred_element_type=f32)                 # (1, 32)
    logits = jnp.dot(pooled, p_ref[R_WC:R_WC + E, 0:2],
                     preferred_element_type=f32) + p_ref[R_BC:R_BC + 1, 0:2]
    out_ref[...] = softmax(logits)                                        # (1, 2)


def prepare_params(p):
    """Pack all parameters into a single (376, 128) f32 blob (one DMA).

    Fuses Wq|Wk|Wv head-block-major (Q columns pre-scaled by 1/sqrt(dim_head)),
    so the kernel needs only aligned static slices.
    """
    scale = 1.0 / np.sqrt(DH)
    blob = np.zeros((TOTAL_ROWS, QKV_W), np.float32)
    for l in range(L):
        off = l * LAYER_ROWS
        wq, wk, wv = (np.asarray(p[n][l]) for n in ('wq', 'wk', 'wv'))
        bq, bk, bv = (np.asarray(p[n][l])[0] for n in ('bq', 'bk', 'bv'))
        for j in range(H):
            c = QKV_BLK * j
            r = slice(DH * j, DH * (j + 1))
            blob[off + R_WQKV:off + R_WQKV + E, c:c + DH] = wq[:, r] * scale
            blob[off + R_WQKV:off + R_WQKV + E, c + DH:c + 2 * DH] = wk[:, r]
            blob[off + R_WQKV:off + R_WQKV + E, c + 2 * DH:c + 3 * DH] = wv[:, r]
            blob[off + R_BQKV, c:c + DH] = bq[r] * scale
            blob[off + R_BQKV, c + DH:c + 2 * DH] = bk[r]
            blob[off + R_BQKV, c + 2 * DH:c + 3 * DH] = bv[r]
        blob[off + R_BO, 0:E] = np.asarray(p['bo'][l])[0]
        blob[off + R_G1, 0:E] = np.asarray(p['g1'][l])[0]
        blob[off + R_BE1, 0:E] = np.asarray(p['be1'][l])[0]
        blob[off + R_B1, 0:HID] = np.asarray(p['b1'][l])[0]
        blob[off + R_B2, 0:E] = np.asarray(p['b2'][l])[0]
        blob[off + R_G2, 0:E] = np.asarray(p['g2'][l])[0]
        blob[off + R_BE2, 0:E] = np.asarray(p['be2'][l])[0]
        blob[off + R_WO:off + R_WO + E, 0:E] = np.asarray(p['wo'][l])
        blob[off + R_W1:off + R_W1 + E, 0:HID] = np.asarray(p['w1'][l])
        blob[off + R_W2:off + R_W2 + HID, 0:E] = np.asarray(p['w2'][l])
    blob[R_WC:R_WC + E, 0:2] = np.asarray(p['wc'])
    blob[R_BC, 0:2] = np.asarray(p['bc'])[0]
    return jnp.asarray(blob)


def encoder_classifier(x, pad_index, packed_params):
    """x: (S, E) f32; pad_index: (1, S) with 0/1 entries; packed_params: (376, 128)."""
    pad = pad_index.astype(jnp.float32)                                   # (1, S)

    # Combined additive mask in the head-major layout (index m = S*j + s maps to
    # torch flat row mt = H*s + j; head = mt // S, key position = mt % S).
    m = np.arange(H * S)
    mt = H * (m % S) + (m // S)
    head = mt // S
    bpos = mt % S
    same_head = jnp.asarray(head[:, None] == head[None, :])               # (32, 32)
    key_pad = pad[0, bpos]                                                # (32,)
    mask32 = jnp.where(same_head & (key_pad[None, :] == 0.0), 0.0, -1e9)

    # Masked mean-pool vector: (1 - pad) / count with count = #non-padded rows.
    keep = 1.0 - pad
    pool = keep / jnp.sum(keep)

    data = jnp.zeros((DATA_ROWS, E), jnp.float32)
    data = data.at[D_X:D_X + S, :].set(x.astype(jnp.float32))
    data = data.at[D_MASK:D_MASK + H * S, :].set(mask32.astype(jnp.float32))
    data = data.at[D_POOL, 0:S].set(pool[0])

    vmem = pl.BlockSpec(memory_space=pltpu.MemorySpace.VMEM)
    out = pl.pallas_call(
        encoder_classifier_kernel,
        out_shape=jax.ShapeDtypeStruct((1, 2), jnp.float32),
        in_specs=[vmem, vmem],
        out_specs=vmem,
    )(data, packed_params)
    return out[0]


def init_params(key):
    def lin(key, fan_in, fan_out):
        k1, k2 = jax.random.split(key)
        bound = 1.0 / (fan_in ** 0.5)
        w = jax.random.uniform(k1, (fan_in, fan_out), jnp.float32, -bound, bound)
        b = jax.random.uniform(k2, (1, fan_out), jnp.float32, -bound, bound)
        return w, b

    layers_spec = [('wq', 'bq', E, E), ('wk', 'bk', E, E), ('wv', 'bv', E, E),
                   ('wo', 'bo', E, E), ('w1', 'b1', E, HID), ('w2', 'b2', HID, E)]
    keys = jax.random.split(key, L * len(layers_spec) + 1)
    p, idx = {}, 0
    for wname, bname, fi, fo in layers_spec:
        ws, bs = [], []
        for _ in range(L):
            w, b = lin(keys[idx], fi, fo)
            idx += 1
            ws.append(w)
            bs.append(b)
        p[wname] = jnp.stack(ws)     # (L, fi, fo)
        p[bname] = jnp.stack(bs)     # (L, 1, fo)
    p['g1'] = jnp.ones((L, 1, E), jnp.float32)
    p['be1'] = jnp.zeros((L, 1, E), jnp.float32)
    p['g2'] = jnp.ones((L, 1, E), jnp.float32)
    p['be2'] = jnp.zeros((L, 1, E), jnp.float32)
    p['wc'], p['bc'] = lin(keys[idx], E, 2)   # (E, 2), (1, 2)
    return p


def reference(x, pad, p):
    # Pure-JAX mirror of the PyTorch forward (uses the same raw reshapes).
    def ln(v, g, b):
        mu = jnp.mean(v, axis=-1, keepdims=True)
        var = jnp.mean((v - mu) ** 2, axis=-1, keepdims=True)
        return (v - mu) / jnp.sqrt(var + EPS) * g + b

    out = x
    for l in range(L):
        q = out @ p['wq'][l] + p['bq'][l]
        k = out @ p['wk'][l] + p['bk'][l]
        v = out @ p['wv'][l] + p['bv'][l]
        qh, kh, vh = (t.reshape(H, S, DH) for t in (q, k, v))
        sc = jnp.einsum('hqd,hkd->hqk', qh, kh) / DH ** 0.5
        sc = jnp.where(pad == 1.0, -1e9, sc)
        sc = jax.nn.softmax(sc, axis=-1)
        attn = jnp.einsum('hqk,hkd->hqd', sc, vh).reshape(S, H * DH)
        o = ln(attn @ p['wo'][l] + p['bo'][l] + out, p['g1'][l], p['be1'][l])
        hdn = o @ p['w1'][l] + p['b1'][l]
        hdn = jnp.where(hdn >= 0, hdn, NEG_SLOPE * hdn)
        out = ln(hdn @ p['w2'][l] + p['b2'][l] + o, p['g2'][l], p['be2'][l])
    out = jnp.where(pad.T != 0, 0.0, out)
    count = jnp.sum(jnp.any(out != 0, axis=1))
    pooled = jnp.sum(out, axis=0) / count
    logits = pooled @ p['wc'] + p['bc'][0]
    return jax.nn.softmax(logits, axis=-1)


if __name__ == "__main__":
    key = jax.random.PRNGKey(0)
    k_param, k_x = jax.random.split(key)
    params = init_params(k_param)
    packed = prepare_params(params)
    x = jax.random.normal(k_x, (S, E), jnp.float32)
    # last two sequence positions are padding
    pad_index = (jnp.arange(S) >= S - 2).astype(jnp.float32)[None, :]   # (1, S)

    run = jax.jit(encoder_classifier)
    out = jax.block_until_ready(run(x, pad_index, packed))

    ref = reference(x, pad_index, params)
    assert out.shape == (2,)
    assert np.allclose(np.asarray(out), np.asarray(ref), atol=2e-2), (out, ref)
    print("KERNEL_OK")
</pallas_src>

<mosaic_0001>
module attributes {stable_mosaic.version = 11 : i64} {
  func.func @encoder_classifier_kernel(%arg0: memref<48x32xf32, #tpu.memory_space<vmem>>, %arg1: memref<376x128xf32, #tpu.memory_space<vmem>>, %arg2: memref<1x2xf32, #tpu.memory_space<vmem>>) attributes {dimension_semantics = [], scalar_prefetch = 0 : i64, scratch_operands = 0 : i64, tpu.core_type = #tpu.core_type<tc>} {
    %c0 = arith.constant 0 : index
    %c0_0 = arith.constant 0 : index
    %0 = vector.load %arg0[%c0, %c0_0] : memref<48x32xf32, #tpu.memory_space<vmem>>, vector<8x32xf32>
    %c8 = arith.constant 8 : index
    %c0_1 = arith.constant 0 : index
    %1 = vector.load %arg0[%c8, %c0_1] : memref<48x32xf32, #tpu.memory_space<vmem>>, vector<32x32xf32>
    %c40 = arith.constant 40 : index
    %c0_2 = arith.constant 0 : index
    %2 = vector.load %arg0[%c40, %c0_2] : memref<48x32xf32, #tpu.memory_space<vmem>>, vector<1x8xf32>
    %3 = tpu.iota {dimensions = array<i32: 0>} : vector<32x8xi32>
    %4 = tpu.iota {dimensions = array<i32: 1>} : vector<32x8xi32>
    %c0_i32 = arith.constant 0 : i32
    %5 = vector.broadcast %c0_i32 : i32 to vector<32x8xi32>
    %6 = arith.addi %5, %4 : vector<32x8xi32>
    %7 = arith.cmpi eq, %3, %6 : vector<32x8xi32>
    %8 = arith.extui %7 : vector<32x8xi1> to vector<32x8xi32>
    %9 = arith.sitofp %8 : vector<32x8xi32> to vector<32x8xf32>
    %c8_i32 = arith.constant 8 : i32
    %10 = vector.broadcast %c8_i32 : i32 to vector<32x8xi32>
    %11 = arith.addi %10, %4 : vector<32x8xi32>
    %12 = arith.cmpi eq, %3, %11 : vector<32x8xi32>
    %13 = arith.extui %12 : vector<32x8xi1> to vector<32x8xi32>
    %14 = arith.sitofp %13 : vector<32x8xi32> to vector<32x8xf32>
    %c16_i32 = arith.constant 16 : i32
    %15 = vector.broadcast %c16_i32 : i32 to vector<32x8xi32>
    %16 = arith.addi %15, %4 : vector<32x8xi32>
    %17 = arith.cmpi eq, %3, %16 : vector<32x8xi32>
    %18 = arith.extui %17 : vector<32x8xi1> to vector<32x8xi32>
    %19 = arith.sitofp %18 : vector<32x8xi32> to vector<32x8xf32>
    %c24_i32 = arith.constant 24 : i32
    %20 = vector.broadcast %c24_i32 : i32 to vector<32x8xi32>
    %21 = arith.addi %20, %4 : vector<32x8xi32>
    %22 = arith.cmpi eq, %3, %21 : vector<32x8xi32>
    %23 = arith.extui %22 : vector<32x8xi1> to vector<32x8xi32>
    %24 = arith.sitofp %23 : vector<32x8xi32> to vector<32x8xf32>
    %c0_3 = arith.constant 0 : index
    %c0_4 = arith.constant 0 : index
    %25 = vector.load %arg1[%c0_3, %c0_4] : memref<376x128xf32, #tpu.memory_space<vmem>>, vector<32x128xf32>
    %cst = arith.constant dense<0.000000e+00> : vector<8x128xf32>
    %26 = tpu.matmul %0, %25, %cst {dimension_numbers = #tpu.dot_dimension_numbers<[1], [0], [0], [1], [0, 0, 1, 1], [], []>} : vector<8x32xf32>, vector<32x128xf32>, vector<8x128xf32> -> vector<8x128xf32>
    %c32 = arith.constant 32 : index
    %c0_5 = arith.constant 0 : index
    %27 = vector.load %arg1[%c32, %c0_5] : memref<376x128xf32, #tpu.memory_space<vmem>>, vector<1x128xf32>
    %28 = vector.broadcast %27 : vector<1x128xf32> to vector<8x128xf32>
    %29 = arith.addf %26, %28 : vector<8x128xf32>
    %30 = vector.extract_strided_slice %29 {offsets = [0, 0], sizes = [8, 32], strides = [1, 1]} : vector<8x128xf32> to vector<8x32xf32>
    %cst_6 = arith.constant dense<0.000000e+00> : vector<32x32xf32>
    %31 = tpu.matmul %9, %30, %cst_6 {dimension_numbers = #tpu.dot_dimension_numbers<[1], [0], [0], [1], [0, 0, 1, 1], [], []>} : vector<32x8xf32>, vector<8x32xf32>, vector<32x32xf32> -> vector<32x32xf32>
    %32 = vector.extract_strided_slice %29 {offsets = [0, 32], sizes = [8, 32], strides = [1, 1]} : vector<8x128xf32> to vector<8x32xf32>
    %cst_7 = arith.constant dense<0.000000e+00> : vector<32x32xf32>
    %33 = tpu.matmul %14, %32, %cst_7 {dimension_numbers = #tpu.dot_dimension_numbers<[1], [0], [0], [1], [0, 0, 1, 1], [], []>} : vector<32x8xf32>, vector<8x32xf32>, vector<32x32xf32> -> vector<32x32xf32>
    %34 = arith.addf %31, %33 : vector<32x32xf32>
    %35 = vector.extract_strided_slice %29 {offsets = [0, 64], sizes = [8, 32], strides = [1, 1]} : vector<8x128xf32> to vector<8x32xf32>
    %cst_8 = arith.constant dense<0.000000e+00> : vector<32x32xf32>
    %36 = tpu.matmul %19, %35, %cst_8 {dimension_numbers = #tpu.dot_dimension_numbers<[1], [0], [0], [1], [0, 0, 1, 1], [], []>} : vector<32x8xf32>, vector<8x32xf32>, vector<32x32xf32> -> vector<32x32xf32>
    %37 = arith.addf %34, %36 : vector<32x32xf32>
    %38 = vector.extract_strided_slice %29 {offsets = [0, 96], sizes = [8, 32], strides = [1, 1]} : vector<8x128xf32> to vector<8x32xf32>
    %cst_9 = arith.constant dense<0.000000e+00> : vector<32x32xf32>
    %39 = tpu.matmul %24, %38, %cst_9 {dimension_numbers = #tpu.dot_dimension_numbers<[1], [0], [0], [1], [0, 0, 1, 1], [], []>} : vector<32x8xf32>, vector<8x32xf32>, vector<32x32xf32> -> vector<32x32xf32>
    %40 = arith.addf %37, %39 : vector<32x32xf32>
    %41 = vector.extract_strided_slice %40 {offsets = [0, 0], sizes = [32, 8], strides = [1, 1]} : vector<32x32xf32> to vector<32x8xf32>
    %42 = vector.extract_strided_slice %40 {offsets = [0, 8], sizes = [32, 8], strides = [1, 1]} : vector<32x32xf32> to vector<32x8xf32>
    %43 = vector.extract_strided_slice %40 {offsets = [0, 16], sizes = [32, 8], strides = [1, 1]} : vector<32x32xf32> to vector<32x8xf32>
    %cst_10 = arith.constant dense<0.000000e+00> : vector<32x32xf32>
    %44 = tpu.matmul %41, %42, %cst_10 {dimension_numbers = #tpu.dot_dimension_numbers<[1], [1], [0], [0], [0, 0, 1, 0], [], []>} : vector<32x8xf32>, vector<32x8xf32>, vector<32x32xf32> -> vector<32x32xf32>
    %45 = arith.addf %44, %1 : vector<32x32xf32>
    %cst_11 = arith.constant dense<0xFF800000> : vector<32xf32>
    %46 = vector.multi_reduction <maximumf>, %45, %cst_11 [1] : vector<32x32xf32> to vector<32xf32>
    %47 = vector.shape_cast %46 : vector<32xf32> to vector<32x1xf32>
    %48 = vector.broadcast %47 : vector<32x1xf32> to vector<32x32xf32>
    %49 = arith.subf %45, %48 : vector<32x32xf32>
    %50 = math.exp %49 : vector<32x32xf32>
    %cst_12 = arith.constant dense<0.000000e+00> : vector<32xf32>
    %51 = vector.multi_reduction <add>, %50, %cst_12 [1] : vector<32x32xf32> to vector<32xf32>
    %52 = vector.shape_cast %51 : vector<32xf32> to vector<32x1xf32>
    %53 = tpu.reciprocal %52 {approx = true} : vector<32x1xf32> -> vector<32x1xf32>
    %54 = vector.broadcast %53 : vector<32x1xf32> to vector<32x32xf32>
    %55 = arith.mulf %50, %54 : vector<32x32xf32>
    %cst_13 = arith.constant dense<0.000000e+00> : vector<32x8xf32>
    %56 = tpu.matmul %55, %43, %cst_13 {dimension_numbers = #tpu.dot_dimension_numbers<[1], [0], [0], [1], [0, 0, 1, 1], [], []>} : vector<32x32xf32>, vector<32x8xf32>, vector<32x8xf32> -> vector<32x8xf32>
    %57 = vector.extract_strided_slice %56 {offsets = [0, 0], sizes = [8, 8], strides = [1, 1]} : vector<32x8xf32> to vector<8x8xf32>
    %c40_14 = arith.constant 40 : index
    %c0_15 = arith.constant 0 : index
    %58 = vector.load %arg1[%c40_14, %c0_15] : memref<376x128xf32, #tpu.memory_space<vmem>>, vector<8x32xf32>
    %cst_16 = arith.constant dense<0.000000e+00> : vector<8x32xf32>
    %59 = tpu.matmul %57, %58, %cst_16 {dimension_numbers = #tpu.dot_dimension_numbers<[1], [0], [0], [1], [0, 0, 1, 1], [], []>} : vector<8x8xf32>, vector<8x32xf32>, vector<8x32xf32> -> vector<8x32xf32>
    %60 = vector.extract_strided_slice %56 {offsets = [8, 0], sizes = [8, 8], strides = [1, 1]} : vector<32x8xf32> to vector<8x8xf32>
    %c48 = arith.constant 48 : index
    %c0_17 = arith.constant 0 : index
    %61 = vector.load %arg1[%c48, %c0_17] : memref<376x128xf32, #tpu.memory_space<vmem>>, vector<8x32xf32>
    %cst_18 = arith.constant dense<0.000000e+00> : vector<8x32xf32>
    %62 = tpu.matmul %60, %61, %cst_18 {dimension_numbers = #tpu.dot_dimension_numbers<[1], [0], [0], [1], [0, 0, 1, 1], [], []>} : vector<8x8xf32>, vector<8x32xf32>, vector<8x32xf32> -> vector<8x32xf32>
    %63 = arith.addf %59, %62 : vector<8x32xf32>
    %64 = vector.extract_strided_slice %56 {offsets = [16, 0], sizes = [8, 8], strides = [1, 1]} : vector<32x8xf32> to vector<8x8xf32>
    %c56 = arith.constant 56 : index
    %c0_19 = arith.constant 0 : index
    %65 = vector.load %arg1[%c56, %c0_19] : memref<376x128xf32, #tpu.memory_space<vmem>>, vector<8x32xf32>
    %cst_20 = arith.constant dense<0.000000e+00> : vector<8x32xf32>
    %66 = tpu.matmul %64, %65, %cst_20 {dimension_numbers = #tpu.dot_dimension_numbers<[1], [0], [0], [1], [0, 0, 1, 1], [], []>} : vector<8x8xf32>, vector<8x32xf32>, vector<8x32xf32> -> vector<8x32xf32>
    %67 = arith.addf %63, %66 : vector<8x32xf32>
    %68 = vector.extract_strided_slice %56 {offsets = [24, 0], sizes = [8, 8], strides = [1, 1]} : vector<32x8xf32> to vector<8x8xf32>
    %c64 = arith.constant 64 : index
    %c0_21 = arith.constant 0 : index
    %69 = vector.load %arg1[%c64, %c0_21] : memref<376x128xf32, #tpu.memory_space<vmem>>, vector<8x32xf32>
    %cst_22 = arith.constant dense<0.000000e+00> : vector<8x32xf32>
    %70 = tpu.matmul %68, %69, %cst_22 {dimension_numbers = #tpu.dot_dimension_numbers<[1], [0], [0], [1], [0, 0, 1, 1], [], []>} : vector<8x8xf32>, vector<8x32xf32>, vector<8x32xf32> -> vector<8x32xf32>
    %71 = arith.addf %67, %70 : vector<8x32xf32>
    %c33 = arith.constant 33 : index
    %c0_23 = arith.constant 0 : index
    %72 = vector.load %arg1[%c33, %c0_23] : memref<376x128xf32, #tpu.memory_space<vmem>>, vector<1x32xf32>
    %73 = vector.broadcast %72 : vector<1x32xf32> to vector<8x32xf32>
    %74 = arith.addf %71, %73 : vector<8x32xf32>
    %75 = arith.addf %74, %0 : vector<8x32xf32>
    %c34 = arith.constant 34 : index
    %c0_24 = arith.constant 0 : index
    %76 = vector.load %arg1[%c34, %c0_24] : memref<376x128xf32, #tpu.memory_space<vmem>>, vector<1x32xf32>
    %c35 = arith.constant 35 : index
    %c0_25 = arith.constant 0 : index
    %77 = vector.load %arg1[%c35, %c0_25] : memref<376x128xf32, #tpu.memory_space<vmem>>, vector<1x32xf32>
    %cst_26 = arith.constant dense<0.000000e+00> : vector<8xf32>
    %78 = vector.multi_reduction <add>, %75, %cst_26 [1] : vector<8x32xf32> to vector<8xf32>
    %79 = vector.shape_cast %78 : vector<8xf32> to vector<8x1xf32>
    %cst_27 = arith.constant 3.200000e+01 : f32
    %80 = vector.broadcast %cst_27 : f32 to vector<8x1xf32>
    %81 = arith.divf %79, %80 : vector<8x1xf32>
    %82 = vector.broadcast %81 : vector<8x1xf32> to vector<8x32xf32>
    %83 = arith.subf %75, %82 : vector<8x32xf32>
    %84 = arith.mulf %83, %83 : vector<8x32xf32>
    %cst_28 = arith.constant dense<0.000000e+00> : vector<8xf32>
    %85 = vector.multi_reduction <add>, %84, %cst_28 [1] : vector<8x32xf32> to vector<8xf32>
    %86 = vector.shape_cast %85 : vector<8xf32> to vector<8x1xf32>
    %cst_29 = arith.constant 3.200000e+01 : f32
    %87 = vector.broadcast %cst_29 : f32 to vector<8x1xf32>
    %88 = arith.divf %86, %87 : vector<8x1xf32>
    %cst_30 = arith.constant 9.99999974E-6 : f32
    %89 = vector.broadcast %cst_30 : f32 to vector<8x1xf32>
    %90 = arith.addf %88, %89 : vector<8x1xf32>
    %91 = math.rsqrt %90 : vector<8x1xf32>
    %92 = vector.broadcast %91 : vector<8x1xf32> to vector<8x32xf32>
    %93 = arith.mulf %83, %92 : vector<8x32xf32>
    %94 = vector.broadcast %76 : vector<1x32xf32> to vector<8x32xf32>
    %95 = arith.mulf %93, %94 : vector<8x32xf32>
    %96 = vector.broadcast %77 : vector<1x32xf32> to vector<8x32xf32>
    %97 = arith.addf %95, %96 : vector<8x32xf32>
    %c72 = arith.constant 72 : index
    %c0_31 = arith.constant 0 : index
    %98 = vector.load %arg1[%c72, %c0_31] : memref<376x128xf32, #tpu.memory_space<vmem>>, vector<32x64xf32>
    %cst_32 = arith.constant dense<0.000000e+00> : vector<8x64xf32>
    %99 = tpu.matmul %97, %98, %cst_32 {dimension_numbers = #tpu.dot_dimension_numbers<[1], [0], [0], [1], [0, 0, 1, 1], [], []>} : vector<8x32xf32>, vector<32x64xf32>, vector<8x64xf32> -> vector<8x64xf32>
    %c36 = arith.constant 36 : index
    %c0_33 = arith.constant 0 : index
    %100 = vector.load %arg1[%c36, %c0_33] : memref<376x128xf32, #tpu.memory_space<vmem>>, vector<1x64xf32>
    %101 = vector.broadcast %100 : vector<1x64xf32> to vector<8x64xf32>
    %102 = arith.addf %99, %101 : vector<8x64xf32>
    %cst_34 = arith.constant 0.000000e+00 : f32
    %103 = vector.broadcast %cst_34 : f32 to vector<8x64xf32>
    %104 = arith.cmpf oge, %102, %103 : vector<8x64xf32>
    %cst_35 = arith.constant 0.00999999977 : f32
    %105 = vector.broadcast %cst_35 : f32 to vector<8x64xf32>
    %106 = arith.mulf %105, %102 : vector<8x64xf32>
    %107 = arith.select %104, %102, %106 : vector<8x64xi1>, vector<8x64xf32>
    %c104 = arith.constant 104 : index
    %c0_36 = arith.constant 0 : index
    %108 = vector.load %arg1[%c104, %c0_36] : memref<376x128xf32, #tpu.memory_space<vmem>>, vector<64x32xf32>
    %cst_37 = arith.constant dense<0.000000e+00> : vector<8x32xf32>
    %109 = tpu.matmul %107, %108, %cst_37 {dimension_numbers = #tpu.dot_dimension_numbers<[1], [0], [0], [1], [0, 0, 1, 1], [], []>} : vector<8x64xf32>, vector<64x32xf32>, vector<8x32xf32> -> vector<8x32xf32>
    %c37 = arith.constant 37 : index
    %c0_38 = arith.constant 0 : index
    %110 = vector.load %arg1[%c37, %c0_38] : memref<376x128xf32, #tpu.memory_space<vmem>>, vector<1x32xf32>
    %111 = vector.broadcast %110 : vector<1x32xf32> to vector<8x32xf32>
    %112 = arith.addf %109, %111 : vector<8x32xf32>
    %113 = arith.addf %112, %97 : vector<8x32xf32>
    %c38 = arith.constant 38 : index
    %c0_39 = arith.constant 0 : index
    %114 = vector.load %arg1[%c38, %c0_39] : memref<376x128xf32, #tpu.memory_space<vmem>>, vector<1x32xf32>
    %c39 = arith.constant 39 : index
    %c0_40 = arith.constant 0 : index
    %115 = vector.load %arg1[%c39, %c0_40] : memref<376x128xf32, #tpu.memory_space<vmem>>, vector<1x32xf32>
    %cst_41 = arith.constant dense<0.000000e+00> : vector<8xf32>
    %116 = vector.multi_reduction <add>, %113, %cst_41 [1] : vector<8x32xf32> to vector<8xf32>
    %117 = vector.shape_cast %116 : vector<8xf32> to vector<8x1xf32>
    %cst_42 = arith.constant 3.200000e+01 : f32
    %118 = vector.broadcast %cst_42 : f32 to vector<8x1xf32>
    %119 = arith.divf %117, %118 : vector<8x1xf32>
    %120 = vector.broadcast %119 : vector<8x1xf32> to vector<8x32xf32>
    %121 = arith.subf %113, %120 : vector<8x32xf32>
    %122 = arith.mulf %121, %121 : vector<8x32xf32>
    %cst_43 = arith.constant dense<0.000000e+00> : vector<8xf32>
    %123 = vector.multi_reduction <add>, %122, %cst_43 [1] : vector<8x32xf32> to vector<8xf32>
    %124 = vector.shape_cast %123 : vector<8xf32> to vector<8x1xf32>
    %cst_44 = arith.constant 3.200000e+01 : f32
    %125 = vector.broadcast %cst_44 : f32 to vector<8x1xf32>
    %126 = arith.divf %124, %125 : vector<8x1xf32>
    %cst_45 = arith.constant 9.99999974E-6 : f32
    %127 = vector.broadcast %cst_45 : f32 to vector<8x1xf32>
    %128 = arith.addf %126, %127 : vector<8x1xf32>
    %129 = math.rsqrt %128 : vector<8x1xf32>
    %130 = vector.broadcast %129 : vector<8x1xf32> to vector<8x32xf32>
    %131 = arith.mulf %121, %130 : vector<8x32xf32>
    %132 = vector.broadcast %114 : vector<1x32xf32> to vector<8x32xf32>
    %133 = arith.mulf %131, %132 : vector<8x32xf32>
    %134 = vector.broadcast %115 : vector<1x32xf32> to vector<8x32xf32>
    %135 = arith.addf %133, %134 : vector<8x32xf32>
    %c168 = arith.constant 168 : index
    %c0_46 = arith.constant 0 : index
    %136 = vector.load %arg1[%c168, %c0_46] : memref<376x128xf32, #tpu.memory_space<vmem>>, vector<32x128xf32>
    %cst_47 = arith.constant dense<0.000000e+00> : vector<8x128xf32>
    %137 = tpu.matmul %135, %136, %cst_47 {dimension_numbers = #tpu.dot_dimension_numbers<[1], [0], [0], [1], [0, 0, 1, 1], [], []>} : vector<8x32xf32>, vector<32x128xf32>, vector<8x128xf32> -> vector<8x128xf32>
    %c200 = arith.constant 200 : index
    %c0_48 = arith.constant 0 : index
    %138 = vector.load %arg1[%c200, %c0_48] : memref<376x128xf32, #tpu.memory_space<vmem>>, vector<1x128xf32>
    %139 = vector.broadcast %138 : vector<1x128xf32> to vector<8x128xf32>
    %140 = arith.addf %137, %139 : vector<8x128xf32>
    %141 = vector.extract_strided_slice %140 {offsets = [0, 0], sizes = [8, 32], strides = [1, 1]} : vector<8x128xf32> to vector<8x32xf32>
    %cst_49 = arith.constant dense<0.000000e+00> : vector<32x32xf32>
    %142 = tpu.matmul %9, %141, %cst_49 {dimension_numbers = #tpu.dot_dimension_numbers<[1], [0], [0], [1], [0, 0, 1, 1], [], []>} : vector<32x8xf32>, vector<8x32xf32>, vector<32x32xf32> -> vector<32x32xf32>
    %143 = vector.extract_strided_slice %140 {offsets = [0, 32], sizes = [8, 32], strides = [1, 1]} : vector<8x128xf32> to vector<8x32xf32>
    %cst_50 = arith.constant dense<0.000000e+00> : vector<32x32xf32>
    %144 = tpu.matmul %14, %143, %cst_50 {dimension_numbers = #tpu.dot_dimension_numbers<[1], [0], [0], [1], [0, 0, 1, 1], [], []>} : vector<32x8xf32>, vector<8x32xf32>, vector<32x32xf32> -> vector<32x32xf32>
    %145 = arith.addf %142, %144 : vector<32x32xf32>
    %146 = vector.extract_strided_slice %140 {offsets = [0, 64], sizes = [8, 32], strides = [1, 1]} : vector<8x128xf32> to vector<8x32xf32>
    %cst_51 = arith.constant dense<0.000000e+00> : vector<32x32xf32>
    %147 = tpu.matmul %19, %146, %cst_51 {dimension_numbers = #tpu.dot_dimension_numbers<[1], [0], [0], [1], [0, 0, 1, 1], [], []>} : vector<32x8xf32>, vector<8x32xf32>, vector<32x32xf32> -> vector<32x32xf32>
    %148 = arith.addf %145, %147 : vector<32x32xf32>
    %149 = vector.extract_strided_slice %140 {offsets = [0, 96], sizes = [8, 32], strides = [1, 1]} : vector<8x128xf32> to vector<8x32xf32>
    %cst_52 = arith.constant dense<0.000000e+00> : vector<32x32xf32>
    %150 = tpu.matmul %24, %149, %cst_52 {dimension_numbers = #tpu.dot_dimension_numbers<[1], [0], [0], [1], [0, 0, 1, 1], [], []>} : vector<32x8xf32>, vector<8x32xf32>, vector<32x32xf32> -> vector<32x32xf32>
    %151 = arith.addf %148, %150 : vector<32x32xf32>
    %152 = vector.extract_strided_slice %151 {offsets = [0, 0], sizes = [32, 8], strides = [1, 1]} : vector<32x32xf32> to vector<32x8xf32>
    %153 = vector.extract_strided_slice %151 {offsets = [0, 8], sizes = [32, 8], strides = [1, 1]} : vector<32x32xf32> to vector<32x8xf32>
    %154 = vector.extract_strided_slice %151 {offsets = [0, 16], sizes = [32, 8], strides = [1, 1]} : vector<32x32xf32> to vector<32x8xf32>
    %cst_53 = arith.constant dense<0.000000e+00> : vector<32x32xf32>
    %155 = tpu.matmul %152, %153, %cst_53 {dimension_numbers = #tpu.dot_dimension_numbers<[1], [1], [0], [0], [0, 0, 1, 0], [], []>} : vector<32x8xf32>, vector<32x8xf32>, vector<32x32xf32> -> vector<32x32xf32>
    %156 = arith.addf %155, %1 : vector<32x32xf32>
    %cst_54 = arith.constant dense<0xFF800000> : vector<32xf32>
    %157 = vector.multi_reduction <maximumf>, %156, %cst_54 [1] : vector<32x32xf32> to vector<32xf32>
    %158 = vector.shape_cast %157 : vector<32xf32> to vector<32x1xf32>
    %159 = vector.broadcast %158 : vector<32x1xf32> to vector<32x32xf32>
    %160 = arith.subf %156, %159 : vector<32x32xf32>
    %161 = math.exp %160 : vector<32x32xf32>
    %cst_55 = arith.constant dense<0.000000e+00> : vector<32xf32>
    %162 = vector.multi_reduction <add>, %161, %cst_55 [1] : vector<32x32xf32> to vector<32xf32>
    %163 = vector.shape_cast %162 : vector<32xf32> to vector<32x1xf32>
    %164 = tpu.reciprocal %163 {approx = true} : vector<32x1xf32> -> vector<32x1xf32>
    %165 = vector.broadcast %164 : vector<32x1xf32> to vector<32x32xf32>
    %166 = arith.mulf %161, %165 : vector<32x32xf32>
    %cst_56 = arith.constant dense<0.000000e+00> : vector<32x8xf32>
    %167 = tpu.matmul %166, %154, %cst_56 {dimension_numbers = #tpu.dot_dimension_numbers<[1], [0], [0], [1], [0, 0, 1, 1], [], []>} : vector<32x32xf32>, vector<32x8xf32>, vector<32x8xf32> -> vector<32x8xf32>
    %168 = vector.extract_strided_slice %167 {offsets = [0, 0], sizes = [8, 8], strides = [1, 1]} : vector<32x8xf32> to vector<8x8xf32>
    %c208 = arith.constant 208 : index
    %c0_57 = arith.constant 0 : index
    %169 = vector.load %arg1[%c208, %c0_57] : memref<376x128xf32, #tpu.memory_space<vmem>>, vector<8x32xf32>
    %cst_58 = arith.constant dense<0.000000e+00> : vector<8x32xf32>
    %170 = tpu.matmul %168, %169, %cst_58 {dimension_numbers = #tpu.dot_dimension_numbers<[1], [0], [0], [1], [0, 0, 1, 1], [], []>} : vector<8x8xf32>, vector<8x32xf32>, vector<8x32xf32> -> vector<8x32xf32>
    %171 = vector.extract_strided_slice %167 {offsets = [8, 0], sizes = [8, 8], strides = [1, 1]} : vector<32x8xf32> to vector<8x8xf32>
    %c216 = arith.constant 216 : index
    %c0_59 = arith.constant 0 : index
    %172 = vector.load %arg1[%c216, %c0_59] : memref<376x128xf32, #tpu.memory_space<vmem>>, vector<8x32xf32>
    %cst_60 = arith.constant dense<0.000000e+00> : vector<8x32xf32>
    %173 = tpu.matmul %171, %172, %cst_60 {dimension_numbers = #tpu.dot_dimension_numbers<[1], [0], [0], [1], [0, 0, 1, 1], [], []>} : vector<8x8xf32>, vector<8x32xf32>, vector<8x32xf32> -> vector<8x32xf32>
    %174 = arith.addf %170, %173 : vector<8x32xf32>
    %175 = vector.extract_strided_slice %167 {offsets = [16, 0], sizes = [8, 8], strides = [1, 1]} : vector<32x8xf32> to vector<8x8xf32>
    %c224 = arith.constant 224 : index
    %c0_61 = arith.constant 0 : index
    %176 = vector.load %arg1[%c224, %c0_61] : memref<376x128xf32, #tpu.memory_space<vmem>>, vector<8x32xf32>
    %cst_62 = arith.constant dense<0.000000e+00> : vector<8x32xf32>
    %177 = tpu.matmul %175, %176, %cst_62 {dimension_numbers = #tpu.dot_dimension_numbers<[1], [0], [0], [1], [0, 0, 1, 1], [], []>} : vector<8x8xf32>, vector<8x32xf32>, vector<8x32xf32> -> vector<8x32xf32>
    %178 = arith.addf %174, %177 : vector<8x32xf32>
    %179 = vector.extract_strided_slice %167 {offsets = [24, 0], sizes = [8, 8], strides = [1, 1]} : vector<32x8xf32> to vector<8x8xf32>
    %c232 = arith.constant 232 : index
    %c0_63 = arith.constant 0 : index
    %180 = vector.load %arg1[%c232, %c0_63] : memref<376x128xf32, #tpu.memory_space<vmem>>, vector<8x32xf32>
    %cst_64 = arith.constant dense<0.000000e+00> : vector<8x32xf32>
    %181 = tpu.matmul %179, %180, %cst_64 {dimension_numbers = #tpu.dot_dimension_numbers<[1], [0], [0], [1], [0, 0, 1, 1], [], []>} : vector<8x8xf32>, vector<8x32xf32>, vector<8x32xf32> -> vector<8x32xf32>
    %182 = arith.addf %178, %181 : vector<8x32xf32>
    %c201 = arith.constant 201 : index
    %c0_65 = arith.constant 0 : index
    %183 = vector.load %arg1[%c201, %c0_65] : memref<376x128xf32, #tpu.memory_space<vmem>>, vector<1x32xf32>
    %184 = vector.broadcast %183 : vector<1x32xf32> to vector<8x32xf32>
    %185 = arith.addf %182, %184 : vector<8x32xf32>
    %186 = arith.addf %185, %135 : vector<8x32xf32>
    %c202 = arith.constant 202 : index
    %c0_66 = arith.constant 0 : index
    %187 = vector.load %arg1[%c202, %c0_66] : memref<376x128xf32, #tpu.memory_space<vmem>>, vector<1x32xf32>
    %c203 = arith.constant 203 : index
    %c0_67 = arith.constant 0 : index
    %188 = vector.load %arg1[%c203, %c0_67] : memref<376x128xf32, #tpu.memory_space<vmem>>, vector<1x32xf32>
    %cst_68 = arith.constant dense<0.000000e+00> : vector<8xf32>
    %189 = vector.multi_reduction <add>, %186, %cst_68 [1] : vector<8x32xf32> to vector<8xf32>
    %190 = vector.shape_cast %189 : vector<8xf32> to vector<8x1xf32>
    %cst_69 = arith.constant 3.200000e+01 : f32
    %191 = vector.broadcast %cst_69 : f32 to vector<8x1xf32>
    %192 = arith.divf %190, %191 : vector<8x1xf32>
    %193 = vector.broadcast %192 : vector<8x1xf32> to vector<8x32xf32>
    %194 = arith.subf %186, %193 : vector<8x32xf32>
    %195 = arith.mulf %194, %194 : vector<8x32xf32>
    %cst_70 = arith.constant dense<0.000000e+00> : vector<8xf32>
    %196 = vector.multi_reduction <add>, %195, %cst_70 [1] : vector<8x32xf32> to vector<8xf32>
    %197 = vector.shape_cast %196 : vector<8xf32> to vector<8x1xf32>
    %cst_71 = arith.constant 3.200000e+01 : f32
    %198 = vector.broadcast %cst_71 : f32 to vector<8x1xf32>
    %199 = arith.divf %197, %198 : vector<8x1xf32>
    %cst_72 = arith.constant 9.99999974E-6 : f32
    %200 = vector.broadcast %cst_72 : f32 to vector<8x1xf32>
    %201 = arith.addf %199, %200 : vector<8x1xf32>
    %202 = math.rsqrt %201 : vector<8x1xf32>
    %203 = vector.broadcast %202 : vector<8x1xf32> to vector<8x32xf32>
    %204 = arith.mulf %194, %203 : vector<8x32xf32>
    %205 = vector.broadcast %187 : vector<1x32xf32> to vector<8x32xf32>
    %206 = arith.mulf %204, %205 : vector<8x32xf32>
    %207 = vector.broadcast %188 : vector<1x32xf32> to vector<8x32xf32>
    %208 = arith.addf %206, %207 : vector<8x32xf32>
    %c240 = arith.constant 240 : index
    %c0_73 = arith.constant 0 : index
    %209 = vector.load %arg1[%c240, %c0_73] : memref<376x128xf32, #tpu.memory_space<vmem>>, vector<32x64xf32>
    %cst_74 = arith.constant dense<0.000000e+00> : vector<8x64xf32>
    %210 = tpu.matmul %208, %209, %cst_74 {dimension_numbers = #tpu.dot_dimension_numbers<[1], [0], [0], [1], [0, 0, 1, 1], [], []>} : vector<8x32xf32>, vector<32x64xf32>, vector<8x64xf32> -> vector<8x64xf32>
    %c204 = arith.constant 204 : index
    %c0_75 = arith.constant 0 : index
    %211 = vector.load %arg1[%c204, %c0_75] : memref<376x128xf32, #tpu.memory_space<vmem>>, vector<1x64xf32>
    %212 = vector.broadcast %211 : vector<1x64xf32> to vector<8x64xf32>
    %213 = arith.addf %210, %212 : vector<8x64xf32>
    %cst_76 = arith.constant 0.000000e+00 : f32
    %214 = vector.broadcast %cst_76 : f32 to vector<8x64xf32>
    %215 = arith.cmpf oge, %213, %214 : vector<8x64xf32>
    %cst_77 = arith.constant 0.00999999977 : f32
    %216 = vector.broadcast %cst_77 : f32 to vector<8x64xf32>
    %217 = arith.mulf %216, %213 : vector<8x64xf32>
    %218 = arith.select %215, %213, %217 : vector<8x64xi1>, vector<8x64xf32>
    %c272 = arith.constant 272 : index
    %c0_78 = arith.constant 0 : index
    %219 = vector.load %arg1[%c272, %c0_78] : memref<376x128xf32, #tpu.memory_space<vmem>>, vector<64x32xf32>
    %cst_79 = arith.constant dense<0.000000e+00> : vector<8x32xf32>
    %220 = tpu.matmul %218, %219, %cst_79 {dimension_numbers = #tpu.dot_dimension_numbers<[1], [0], [0], [1], [0, 0, 1, 1], [], []>} : vector<8x64xf32>, vector<64x32xf32>, vector<8x32xf32> -> vector<8x32xf32>
    %c205 = arith.constant 205 : index
    %c0_80 = arith.constant 0 : index
    %221 = vector.load %arg1[%c205, %c0_80] : memref<376x128xf32, #tpu.memory_space<vmem>>, vector<1x32xf32>
    %222 = vector.broadcast %221 : vector<1x32xf32> to vector<8x32xf32>
    %223 = arith.addf %220, %222 : vector<8x32xf32>
    %224 = arith.addf %223, %208 : vector<8x32xf32>
    %c206 = arith.constant 206 : index
    %c0_81 = arith.constant 0 : index
    %225 = vector.load %arg1[%c206, %c0_81] : memref<376x128xf32, #tpu.memory_space<vmem>>, vector<1x32xf32>
    %c207 = arith.constant 207 : index
    %c0_82 = arith.constant 0 : index
    %226 = vector.load %arg1[%c207, %c0_82] : memref<376x128xf32, #tpu.memory_space<vmem>>, vector<1x32xf32>
    %cst_83 = arith.constant dense<0.000000e+00> : vector<8xf32>
    %227 = vector.multi_reduction <add>, %224, %cst_83 [1] : vector<8x32xf32> to vector<8xf32>
    %228 = vector.shape_cast %227 : vector<8xf32> to vector<8x1xf32>
    %cst_84 = arith.constant 3.200000e+01 : f32
    %229 = vector.broadcast %cst_84 : f32 to vector<8x1xf32>
    %230 = arith.divf %228, %229 : vector<8x1xf32>
    %231 = vector.broadcast %230 : vector<8x1xf32> to vector<8x32xf32>
    %232 = arith.subf %224, %231 : vector<8x32xf32>
    %233 = arith.mulf %232, %232 : vector<8x32xf32>
    %cst_85 = arith.constant dense<0.000000e+00> : vector<8xf32>
    %234 = vector.multi_reduction <add>, %233, %cst_85 [1] : vector<8x32xf32> to vector<8xf32>
    %235 = vector.shape_cast %234 : vector<8xf32> to vector<8x1xf32>
    %cst_86 = arith.constant 3.200000e+01 : f32
    %236 = vector.broadcast %cst_86 : f32 to vector<8x1xf32>
    %237 = arith.divf %235, %236 : vector<8x1xf32>
    %cst_87 = arith.constant 9.99999974E-6 : f32
    %238 = vector.broadcast %cst_87 : f32 to vector<8x1xf32>
    %239 = arith.addf %237, %238 : vector<8x1xf32>
    %240 = math.rsqrt %239 : vector<8x1xf32>
    %241 = vector.broadcast %240 : vector<8x1xf32> to vector<8x32xf32>
    %242 = arith.mulf %232, %241 : vector<8x32xf32>
    %243 = vector.broadcast %225 : vector<1x32xf32> to vector<8x32xf32>
    %244 = arith.mulf %242, %243 : vector<8x32xf32>
    %245 = vector.broadcast %226 : vector<1x32xf32> to vector<8x32xf32>
    %246 = arith.addf %244, %245 : vector<8x32xf32>
    %cst_88 = arith.constant dense<0.000000e+00> : vector<1x32xf32>
    %247 = tpu.matmul %2, %246, %cst_88 {dimension_numbers = #tpu.dot_dimension_numbers<[1], [0], [0], [1], [0, 0, 1, 1], [], []>} : vector<1x8xf32>, vector<8x32xf32>, vector<1x32xf32> -> vector<1x32xf32>
    %c336 = arith.constant 336 : index
    %c0_89 = arith.constant 0 : index
    %248 = vector.load %arg1[%c336, %c0_89] : memref<376x128xf32, #tpu.memory_space<vmem>>, vector<32x2xf32>
    %cst_90 = arith.constant dense<0.000000e+00> : vector<1x2xf32>
    %249 = tpu.matmul %247, %248, %cst_90 {dimension_numbers = #tpu.dot_dimension_numbers<[1], [0], [0], [1], [0, 0, 1, 1], [], []>} : vector<1x32xf32>, vector<32x2xf32>, vector<1x2xf32> -> vector<1x2xf32>
    %c368 = arith.constant 368 : index
    %c0_91 = arith.constant 0 : index
    %250 = vector.load %arg1[%c368, %c0_91] : memref<376x128xf32, #tpu.memory_space<vmem>>, vector<1x2xf32>
    %251 = arith.addf %249, %250 : vector<1x2xf32>
    %cst_92 = arith.constant dense<0xFF800000> : vector<1xf32>
    %252 = vector.multi_reduction <maximumf>, %251, %cst_92 [1] : vector<1x2xf32> to vector<1xf32>
    %253 = vector.shape_cast %252 : vector<1xf32> to vector<1x1xf32>
    %254 = vector.broadcast %253 : vector<1x1xf32> to vector<1x2xf32>
    %255 = arith.subf %251, %254 : vector<1x2xf32>
    %256 = math.exp %255 : vector<1x2xf32>
    %cst_93 = arith.constant dense<0.000000e+00> : vector<1xf32>
    %257 = vector.multi_reduction <add>, %256, %cst_93 [1] : vector<1x2xf32> to vector<1xf32>
    %258 = vector.shape_cast %257 : vector<1xf32> to vector<1x1xf32>
    %259 = tpu.reciprocal %258 {approx = true} : vector<1x1xf32> -> vector<1x1xf32>
    %260 = vector.broadcast %259 : vector<1x1xf32> to vector<1x2xf32>
    %261 = arith.mulf %256, %260 : vector<1x2xf32>
    %c0_94 = arith.constant 0 : index
    %c0_95 = arith.constant 0 : index
    %262 = vector.load %arg2[%c0_94, %c0_95] : memref<1x2xf32, #tpu.memory_space<vmem>>, vector<1x2xf32>
    tpu.vector_store %arg2[%c0_94, %c0_95], %261 {strides = array<i32>} : memref<1x2xf32, #tpu.memory_space<vmem>>, vector<1x2xf32>,
    return
  }
}

</mosaic_0001>

<bundles_post_ra>
// kernel: encoder_classifier.1
= control target key start
LH: loop header
LB: loop body
LE: loop exit
PB: predicated region body
PF: predicated region fallthrough
CT: control target
= control target key end

     0   :  { %vm82_vm0 = vcmask 261120   ;;  %s1910_s0 = inlined_call_operand.vmem [shape: f32[48,32], index: 0, kind: input, shape index: {}]   ;;  %s1911_s1 = inlined_call_operand.vmem [shape: f32[376,128], index: 1, kind: input, shape index: {}]   ;;  %s1912_s2 = inlined_call_operand.hbm [shape: f32[1,2], index: 2, kind: output, shape index: {}]  }
   0x1   :  { %v79_v0 = vld [vmem:[%s1911_s1 + $0x18] sm:$0xff]  ;;  %v78_v1 = vld [vmem:[%s1911_s1 + $0x10] sm:$0xff]  ;;  %v77_v2 = vld [vmem:[%s1911_s1 + $0x8] sm:$0xff] }
   0x2   :  { %98 = vmatpush.msra.mxu0 %v79_v0  ;;  %v76_v3 = vld [vmem:[%s1911_s1] sm:$0xff] }
   0x3   :  { %v1520_v4 = vld [vmem:[%s1910_s0] sm:$0xff] }
   0x4   :  { %99 = vmatpush.msra.mxu0 %v78_v1 }
   0x6   :  { %100 = vmatpush.msra.mxu0 %v77_v2 }
   0x8   :  { %101 = vmatpush.msra.mxu0 %v76_v3 }
   0x9   :  { %1306 = vmatmul.msk.f32.vlgmr.msra.gmra.mxu0 %vm82_vm0, %v1520_v4 }
   0xa   :  { %7 = vsyncpa [#allocation3], 0  ;;  %v1394_v5 = vld [vmem:[%s1911_s1 + $0x20] ss:$0 sm:$0xff]  ;;  %s1482_s21 = smov 32   ;;  %s1483_s22 = smov 64   ;;  %v18_v8 = vlaneseq }
   0xb   :  { %s1484_s23 = smov 96   ;;  %vm110_vm1 = vcmask 64512   ;;  %v1485_v11 = vmov 0.0   ;;  %s1486_s24 = smov 120   ;;  %v1601_v63 = vld [vmem:[%s1910_s0 + $0x8] sm:$0xff]  ;;  %v1608_v3 = vld [vmem:[%s1910_s0 + $0x10] sm:$0xff] }
   0xc   :  { %v19_v9 = vshrl.u32 %v18_v8, 7  ;;  %v24_v10 = vand.u32 127, %v18_v8  ;;  %v1615_v8 = vld [vmem:[%s1910_s0 + $0x18] sm:$0xff]  ;;  %s1487_s5 = smov 112  }
   0xe   :  { %vm25_vm2 = vcmp.eq.s32.totalorder %v19_v9, %v24_v10  ;;  %v20_v13 = vadd.s32 8, %v19_v9  ;;  %v21_v15 = vadd.s32 16, %v19_v9  ;;  %v22_v17 = vadd.s32 24, %v19_v9 }
   0xf   :  { %v1531_v12 = vsel %vm25_vm2, 1.0, %v1485_v11  ;;  %v37_v22 = vadd.s32 8, %v24_v10  ;;  %v50_v23 = vadd.s32 16, %v24_v10  ;;  %v63_v26 = vadd.s32 24, %v24_v10 }
  0x10   :  { %vm26_vm3 = vcmp.eq.s32.totalorder %v20_v13, %v24_v10  ;;  %vm27_vm4 = vcmp.eq.s32.totalorder %v21_v15, %v24_v10  ;;  %vm28_vm5 = vcmp.eq.s32.totalorder %v22_v17, %v24_v10 }
  0x11   :  { %v1536_v14 = vsel %vm26_vm3, 1.0, %v1485_v11  ;;  %v1541_v16 = vsel %vm27_vm4, 1.0, %v1485_v11  ;;  %v1546_v18 = vsel %vm28_vm5, 1.0, %v1485_v11  ;;  %vm39_vm6 = vcmp.eq.s32.totalorder %v20_v13, %v37_v22 }
  0x12   :  { %vm53_vm7 = vcmp.eq.s32.totalorder %v21_v15, %v50_v23  ;;  %v1556_v24 = vsel %vm39_vm6, 1.0, %v1485_v11  ;;  %vm40_vm8 = vcmp.eq.s32.totalorder %v21_v15, %v37_v22  ;;  %vm54_vm9 = vcmp.eq.s32.totalorder %v22_v17, %v50_v23  ;;  %v1622_v15 = vld [vmem:[%s1910_s0 + $0x20] sm:$0xff] }
  0x13   :  { %v1559_v25 = vsel %vm53_vm7, 1.0, %v1485_v11  ;;  %vm67_vm10 = vcmp.eq.s32.totalorder %v22_v17, %v63_v26  ;;  %v1567_v27 = vsel %vm40_vm8, 1.0, %v1485_v11  ;;  %v1570_v28 = vsel %vm54_vm9, 1.0, %v1485_v11 }
  0x14   :  { %v1573_v29 = vsel %vm67_vm10, 1.0, %v1485_v11  ;;  %vm41_vm11 = vcmp.eq.s32.totalorder %v22_v17, %v37_v22  ;;  %vm622_vm3 = vcmask 523264  }
  0x15   :  { %v1582_v30 = vsel %vm41_vm11, 1.0, %v1485_v11 }
  0x86   :  { %v103_v6 = vpop.f32.mrf.mxu0 }
  0x87   :  { %v104_v7 = vadd.f32 %v1394_v5, %v103_v6 }
  0x89   :  { %241 = vrot.lane.b32.xlu1 %v104_v7, %s1482_s21  ;;  %193 = vrot.lane.b32.xlu0 %v104_v7, %s1483_s22 }
  0x8a   :  { %179 = vmatpush.msra.mxu2 %v104_v7 }
  0x8b   :  { %1310 = vmatmul.msk.f32.vlgmr.msra.gmra.mxu2 %vm110_vm1, %v1531_v12 }
  0x91   :  { %107 = vrot.lane.b32.xlu0 %v104_v7, %s1484_s23 }
  0x93   :  { %1311 = vmatmul.msk.f32.gmra.mxu2 %vm110_vm1, %v1536_v14 }
  0x9b   :  { %1312 = vmatmul.msk.f32.gmra.mxu2 %vm110_vm1, %v1541_v16 }
  0xa3   :  { %1313 = vmatmul.msk.f32.gmra.mxu2 %vm110_vm1, %v1546_v18 }
  0xfb   :  { %v242_v19 = vpop.permute.xlu1 %241  ;;  %v194_v20 = vpop.permute.xlu0 %193 }
  0xfc   :  { %223 = vmatpush.msra.mxu3 %v194_v20  ;;  %271 = vmatpush.msrb.mxu0 %v242_v19 }
  0xfd   :  { %224 = vmatmul.f32.vlgmr.msra.gmra.mxu3 %v1485_v11  ;;  %272 = vmatmul.f32.vlgmr.msrb.gmra.mxu0 %v1485_v11 }
 0x103   :  { %v108_v21 = vpop.permute.xlu0 %107 }
 0x104   :  { %138 = vmatpush.msra.mxu1 %v108_v21 }
 0x105   :  { %139 = vmatmul.f32.vlgmr.msra.gmra.mxu1 %v1485_v11  ;;  %227 = vmatmul.f32.gmra.mxu3 %v1485_v11 }
 0x106   :  { %275 = vmatmul.f32.gmra.mxu0 %v1485_v11 }
 0x10d   :  { %1307 = vmatmul.msk.f32.gmra.mxu1 %vm110_vm1, %v1556_v24  ;;  %1314 = vmatmul.msk.f32.gmra.mxu3 %vm110_vm1, %v1559_v25 }
 0x10e   :  { %278 = vmatmul.f32.gmra.mxu0 %v1485_v11  ;;  %v181_v31 = vpop.f32.mrf.mxu2 }
 0x115   :  { %1308 = vmatmul.msk.f32.gmra.mxu1 %vm110_vm1, %v1567_v27  ;;  %1315 = vmatmul.msk.f32.gmra.mxu3 %vm110_vm1, %v1570_v28 }
 0x116   :  { %1316 = vmatmul.msk.f32.gmra.mxu0 %vm110_vm1, %v1573_v29  ;;  %v184_v36 = vpop.f32.mrf.mxu2 }
 0x11d   :  { %1309 = vmatmul.msk.f32.gmra.mxu1 %vm110_vm1, %v1582_v30 }
 0x11e   :  { %v187_v42 = vpop.f32.mrf.mxu2 }
 0x126   :  { %v190_v50 = vpop.f32.mrf.mxu2 }
 0x17a   :  { %v273_v32 = vpop.f32.mrf.mxu0 }
 0x180   :  { %v225_v33 = vpop.f32.mrf.mxu3 }
 0x182   :  { %v140_v34 = vpop.f32.mrf.mxu1 }
 0x183   :  { %v182_v35 = vadd.f32 %v181_v31, %v140_v34  ;;  %v276_v40 = vpop.f32.mrf.mxu0 }
 0x185   :  { %v237_v37 = vadd.f32 %v225_v33, %v182_v35 }
 0x187   :  { %v285_v38 = vadd.f32 %v273_v32, %v237_v37 }
 0x188   :  { %v228_v39 = vpop.f32.mrf.mxu3 }
 0x189   :  { %293 = vrot.lane.b32.xlu0 %v285_v38, %s1486_s24 }
 0x18a   :  { %v143_v41 = vpop.f32.mrf.mxu1 }
 0x18b   :  { %v279_v45 = vpop.f32.mrf.mxu0  ;;  %v185_v48 = vadd.f32 %v184_v36, %v143_v41 }
 0x18d   :  { %v238_v53 = vadd.f32 %v228_v39, %v185_v48 }
 0x18f   :  { %v286_v57 = vadd.f32 %v276_v40, %v238_v53 }
 0x190   :  { %v231_v43 = vpop.f32.mrf.mxu3 }
 0x191   :  { %v1379_v21 = vpack.i.bf16 %v285_v38, %v286_v57 }
 0x192   :  { %v146_v44 = vpop.f32.mrf.mxu1 }
 0x193   :  { %v188_v46 = vadd.f32 %v187_v42, %v146_v44  ;;  %v282_v55 = vpop.f32.mrf.mxu0 }
 0x195   :  { %v239_v47 = vadd.f32 %v231_v43, %v188_v46 }
 0x197   :  { %v287_v49 = vadd.f32 %v279_v45, %v239_v47 }
 0x198   :  { %v234_v52 = vpop.f32.mrf.mxu3 }
 0x199   :  { %297 = vrot.lane.b32.xlu2 %v287_v49, %s1486_s24 }
 0x19a   :  { %v149_v51 = vpop.f32.mrf.mxu1 }
 0x19b   :  { %v191_v54 = vadd.f32 %v190_v50, %v149_v51 }
 0x19d   :  { %v240_v56 = vadd.f32 %v234_v52, %v191_v54 }
 0x19f   :  { %v288_v58 = vadd.f32 %v282_v55, %v240_v56  ;;  %v444_v56 = vld [vmem:[%s1911_s1 + $0x30] sm:$0xff] }
 0x1a0   :  { %463 = vmatpush.msrb.mxu3 %v444_v56 }
 0x1a1   :  { %299 = vrot.lane.b32.xlu1 %v288_v58, %s1486_s24  ;;  %295 = vrot.lane.b32.xlu2 %v286_v57, %s1486_s24  ;;  %v1374_v22 = vpack.i.bf16 %v287_v49, %v288_v58 }
 0x1f3   :  { %v298_v59 = vpop.permute.xlu2 %297 }
 0x1fb   :  { %v296_v61 = vpop.permute.xlu2 %295  ;;  %v294_v62 = vpop.permute.xlu0 %293 }
 0x213   :  { %v300_v60 = vpop.permute.xlu1 %299 }
 0x214   :  { %1317 = vmatpush.xpose.msk.msrb.mxu1 %vm110_vm1, %v300_v60 }
 0x218   :  { %1318 = vmatpush.xpose.msk.msrb.mxu1 %vm110_vm1, %v298_v59 }
 0x21c   :  { %1319 = vmatpush.xpose.msk.msrb.mxu1 %vm110_vm1, %v296_v61 }
 0x220   :  { %1320 = vmatpush.xpose.msk.msrb.mxu1 %vm110_vm1, %v294_v62 }
 0x223   :  { %1321 = vmatmul.msk.f32.vlgmr.msrb.gmra.mxu1 %vm110_vm1, %v285_v38 }
 0x22b   :  { %1322 = vmatmul.msk.f32.gmra.mxu1 %vm110_vm1, %v286_v57 }
 0x233   :  { %1323 = vmatmul.msk.f32.gmra.mxu1 %vm110_vm1, %v287_v49 }
 0x23b   :  { %1324 = vmatmul.msk.f32.gmra.mxu1 %vm110_vm1, %v288_v58 }
 0x2a0   :  { %v334_v0 = vpop.f32.mrf.mxu1 }
 0x2a1   :  { %v335_v1 = vadd.f32 %v334_v0, %v1601_v63 }
 0x2a3   :  { %v346_v2 = vsel %vm82_vm0, %v335_v1, -inf }
 0x2a4   :  { %347 = vmax.xlane.f32.xlu1 %v346_v2 }
 0x2a8   :  { %v337_v5 = vpop.f32.mrf.mxu1 }
 0x2a9   :  { %v338_v6 = vadd.f32 %v337_v5, %v1608_v3 }
 0x2ab   :  { %v349_v7 = vsel %vm82_vm0, %v338_v6, -inf }
 0x2ac   :  { %350 = vmax.xlane.f32.xlu2 %v349_v7  ;;  %v491_v7 = vld [vmem:[%s1911_s1 + $0x38] sm:$0xff] }
 0x2ad   :  { %510 = vmatpush.msra.mxu0 %v491_v7 }
 0x2b0   :  { %v340_v9 = vpop.f32.mrf.mxu1 }
 0x2b1   :  { %v341_v10 = vadd.f32 %v340_v9, %v1615_v8  ;;  %v443_v9 = vld [vmem:[%s1911_s1 + $0x28] sm:$0xff] }
 0x2b2   :  { %486 = vmatpush.msra.mxu3 %v443_v9 }
 0x2b3   :  { %v352_v13 = vsel %vm82_vm0, %v341_v10, -inf }
 0x2b4   :  { %353 = vmax.xlane.f32.xlu0 %v352_v13  ;;  %v516_v13 = vld [vmem:[%s1911_s1 + $0x40] sm:$0xff] }
 0x2b8   :  { %v343_v17 = vpop.f32.mrf.mxu1 }
 0x2b9   :  { %v344_v19 = vadd.f32 %v343_v17, %v1622_v15 }
 0x2bb   :  { %v355_v20 = vsel %vm82_vm0, %v344_v19, -inf }
 0x2bc   :  { %356 = vmax.xlane.f32.xlu2 %v355_v20 }
 0x2c8   :  { %1380 = vrot.lane.b32.xlu0 %v1379_v21, %s1487_s5 }
 0x2d4   :  { %1375 = vrot.lane.b32.xlu2 %v1374_v22, %s1487_s5 }
 0x317   :  { %v348_v23 = vpop.xlane.xlu1 %347 }
 0x318   :  { %v358_v26 = vsub.f32 %v335_v1, %v348_v23 }
 0x31a   :  { %v362_v31 = vmul.f32 1.442695, %v358_v26 }
 0x31c   :  { %1410 = vpow2.f32 %v362_v31 }
 0x31f   :  { %v351_v32 = vpop.xlane.xlu2 %350 }
 0x320   :  { %v359_v33 = vsub.f32 %v338_v6, %v351_v32  ;;  %v1395_v32 = vld [vmem:[%s1911_s1 + $0x21] ss:$0 sm:$0xff] }
 0x322   :  { %v1411_v34 = vpop.eup %1410  ;;  %v364_v35 = vmul.f32 1.442695, %v359_v33 }
 0x323   :  { %v370_v36 = vsel %vm82_vm0, %v1411_v34, 0.0 }
 0x324   :  { %1412 = vpow2.f32 %v364_v35  ;;  %371 = vadd.xlane.f32.xlu1 %v370_v36 }
 0x327   :  { %v354_v37 = vpop.xlane.xlu0 %353 }
 0x328   :  { %v360_v38 = vsub.f32 %v341_v10, %v354_v37 }
 0x32a   :  { %v1413_v39 = vpop.eup %1412  ;;  %v366_v40 = vmul.f32 1.442695, %v360_v38  ;;  %v1488_v38 = vmov 32.0  }
 0x32b   :  { %v373_v41 = vsel %vm82_vm0, %v1413_v39, 0.0 }
 0x32c   :  { %1414 = vpow2.f32 %v366_v40  ;;  %374 = vadd.xlane.f32.xlu1 %v373_v41 }
 0x32f   :  { %v357_v42 = vpop.xlane.xlu2 %356 }
 0x330   :  { %v361_v43 = vsub.f32 %v344_v19, %v357_v42 }
 0x332   :  { %v1415_v44 = vpop.eup %1414  ;;  %v368_v45 = vmul.f32 1.442695, %v361_v43 }
 0x333   :  { %v376_v46 = vsel %vm82_vm0, %v1415_v44, 0.0 }
 0x334   :  { %1416 = vpow2.f32 %v368_v45  ;;  %377 = vadd.xlane.f32.xlu1 %v376_v46 }
 0x337   :  { %v1376_v47 = vpop.permute.xlu2 %1375 }
 0x338   :  { %v1377_v48 = vunpack.i.l.bf16 %v1376_v47  ;;  %v1378_v51 = vunpack.i.h.bf16 %v1376_v47 }
 0x33a   :  { %v1417_v49 = vpop.eup %1416  ;;  %v1381_v50 = vpop.permute.xlu0 %1380  ;;  %426 = vmatpush.msrb.mxu2 %v1377_v48 }
 0x33b   :  { %v379_v52 = vsel %vm82_vm0, %v1417_v49, 0.0  ;;  %v1382_v53 = vunpack.i.l.bf16 %v1381_v50  ;;  %v1383_v54 = vunpack.i.h.bf16 %v1381_v50  ;;  %v582_v50 = vld [vmem:[%s1911_s1 + $0x58] sm:$0xff] }
 0x33c   :  { %427 = vmatpush.msrb.mxu2 %v1378_v51  ;;  %380 = vadd.xlane.f32.xlu1 %v379_v52  ;;  %v581_v51 = vld [vmem:[%s1911_s1 + $0x50] sm:$0xff]  ;;  %v580_v52 = vld [vmem:[%s1911_s1 + $0x48] sm:$0xff] }
 0x33e   :  { %428 = vmatpush.msrb.mxu2 %v1382_v53  ;;  %v619_v53 = vld [vmem:[%s1911_s1 + $0xa0] sm:$0xff] }
 0x33f   :  { %634 = vmatpush.msra.mxu1 %v619_v53 }
 0x340   :  { %429 = vmatpush.msrb.mxu2 %v1383_v54  ;;  %v618_v54 = vld [vmem:[%s1911_s1 + $0x98] sm:$0xff] }
 0x341   :  { %635 = vmatpush.msra.mxu1 %v618_v54 }
 0x397   :  { %v372_v55 = vpop.xlane.xlu1 %371 }
 0x398   :  { %1418 = vrcp.f32 %v372_v55  ;;  %v617_v55 = vld [vmem:[%s1911_s1 + $0x90] sm:$0xff] }
 0x399   :  { %636 = vmatpush.msra.mxu1 %v617_v55 }
 0x39e   :  { %v1419_v57 = vpop.eup %1418 }
 0x39f   :  { %v375_v58 = vpop.xlane.xlu1 %374  ;;  %v386_v59 = vmul.f32 %v1419_v57, %v1411_v34 }
 0x3a0   :  { %1420 = vrcp.f32 %v375_v58  ;;  %v616_v58 = vld [vmem:[%s1911_s1 + $0x88] sm:$0xff] }
 0x3a1   :  { %1325 = vmatmul.msk.f32.vlgmr.msrb.gmra.mxu2 %vm82_vm0, %v386_v59  ;;  %637 = vmatpush.msra.mxu1 %v616_v58 }
 0x3a6   :  { %v1421_v60 = vpop.eup %1420 }
 0x3a7   :  { %v378_v61 = vpop.xlane.xlu1 %377  ;;  %v387_v62 = vmul.f32 %v1421_v60, %v1413_v39  ;;  %v615_v60 = vld [vmem:[%s1911_s1 + $0x80] sm:$0xff] }
 0x3a8   :  { %1422 = vrcp.f32 %v378_v61  ;;  %638 = vmatpush.msra.mxu1 %v615_v60 }
 0x3a9   :  { %1326 = vmatmul.msk.f32.gmra.mxu2 %vm82_vm0, %v387_v62 }
 0x3ae   :  { %v1423_v0 = vpop.eup %1422 }
 0x3af   :  { %v381_v1 = vpop.xlane.xlu1 %380  ;;  %v388_v2 = vmul.f32 %v1423_v0, %v1415_v44 }
 0x3b0   :  { %1424 = vrcp.f32 %v381_v1 }
 0x3b1   :  { %1327 = vmatmul.msk.f32.gmra.mxu2 %vm82_vm0, %v388_v2  ;;  %1426 = vrcp.f32 %v1488_v38 }
 0x3b6   :  { %v1425_v5 = vpop.eup %1424 }
 0x3b7   :  { %v389_v6 = vmul.f32 %v1425_v5, %v1417_v49  ;;  %v1427_v39 = vpop.eup %1426  ;;  %v583_v49 = vld [vmem:[%s1911_s1 + $0x60] sm:$0xff] }
 0x3b8   :  { %v551_v40 = vmul.f32 32.0, %v1427_v39  ;;  %vm555_vm12 = vweird.f32 %v1427_v39  ;;  %601 = vmatpush.msrb.mxu0 %v583_v49 }
 0x3b9   :  { %1328 = vmatmul.msk.f32.gmra.mxu2 %vm82_vm0, %v389_v6  ;;  %v1396_v6 = vld [vmem:[%s1911_s1 + $0x22] ss:$0 sm:$0xff] }
 0x3ba   :  { %v552_v41 = vsub.f32 1.0, %v551_v40  ;;  %602 = vmatpush.msrb.mxu0 %v582_v50 }
 0x3bc   :  { %v553_v42 = vmul.f32 %v1427_v39, %v552_v41  ;;  %603 = vmatpush.msrb.mxu0 %v581_v51 }
 0x3be   :  { %v554_v43 = vadd.f32 %v1427_v39, %v553_v42  ;;  %604 = vmatpush.msrb.mxu0 %v580_v52 }
 0x3c0   :  { %v1657_v44 = vsel %vm555_vm12, %v1427_v39, %v554_v43  ;;  %v678_v43 = vld [vmem:[%s1911_s1 + $0xc0] sm:$0xff] }
 0x424   :  { %v431_v10 = vpop.f32.mrf.mxu2 }
 0x42c   :  { %v434_v17 = vpop.f32.mrf.mxu2 }
 0x42d   :  { %1329 = vmatmul.msk.f32.vlgmr.msrb.gmra.mxu3 %vm110_vm1, %v434_v17 }
 0x42e   :  { %535 = vmatpush.msrb.mxu3 %v516_v13 }
 0x434   :  { %v437_v19 = vpop.f32.mrf.mxu2 }
 0x435   :  { %1330 = vmatmul.msk.f32.vlgmr.msra.gmra.mxu3 %vm110_vm1, %v431_v10  ;;  %1331 = vmatmul.msk.f32.vlgmr.msra.gmra.mxu0 %vm110_vm1, %v437_v19  ;;  %v1397_v10 = vld [vmem:[%s1911_s1 + $0x23] ss:$0 sm:$0xff]  ;;  %v614_v19 = vld [vmem:[%s1911_s1 + $0x78] sm:$0xff] }
 0x436   :  { %639 = vmatpush.msra.mxu1 %v614_v19  ;;  %696 = vmatpush.msra.mxu3 %v678_v43 }
 0x43c   :  { %v440_v20 = vpop.f32.mrf.mxu2 }
 0x43d   :  { %1332 = vmatmul.msk.f32.vlgmr.msrb.gmra.mxu3 %vm110_vm1, %v440_v20  ;;  %v613_v20 = vld [vmem:[%s1911_s1 + $0x70] sm:$0xff] }
 0x43e   :  { %640 = vmatpush.msra.mxu1 %v613_v20 }
 0x4b0   :  { %v465_v21 = vpop.f32.mrf.mxu3 }
 0x4b2   :  { %v512_v26 = vpop.f32.mrf.mxu0 }
 0x4b8   :  { %v488_v22 = vpop.f32.mrf.mxu3 }
 0x4b9   :  { %v489_v23 = vadd.f32 %v488_v22, %v465_v21  ;;  %v612_v21 = vld [vmem:[%s1911_s1 + $0x68] sm:$0xff]  ;;  %v1398_v22 = vld [vmem:[%s1911_s1 + $0x24] ss:$0 sm:$0xff] }
 0x4ba   :  { %641 = vmatpush.msra.mxu1 %v612_v21 }
 0x4bb   :  { %v515_v31 = vadd.f32 %v512_v26, %v489_v23 }
 0x4c0   :  { %v537_v33 = vpop.f32.mrf.mxu3 }
 0x4c1   :  { %v540_v34 = vadd.f32 %v537_v33, %v515_v31  ;;  %v1399_v33 = vld [vmem:[%s1911_s1 + $0x25] ss:$0 sm:$0xff] }
 0x4c3   :  { %v543_v35 = vadd.f32 %v1395_v32, %v540_v34 }
 0x4c5   :  { %v544_v36 = vadd.f32 %v543_v35, %v1520_v4 }
 0x4c7   :  { %v547_v37 = vsel %vm82_vm0, %v544_v36, 0.0 }
 0x4c8   :  { %548 = vadd.xlane.f32.xlu0 %v547_v37 }
 0x53b   :  { %v549_v45 = vpop.xlane.xlu0 %548 }
 0x53c   :  { %v557_v46 = vmul.f32 %v1657_v44, %v549_v45  ;;  %v677_v45 = vld [vmem:[%s1911_s1 + $0xb8] sm:$0xff] }
 0x53d   :  { %697 = vmatpush.msra.mxu3 %v677_v45 }
 0x53e   :  { %v558_v47 = vsub.f32 %v544_v36, %v557_v46  ;;  %v676_v46 = vld [vmem:[%s1911_s1 + $0xb0] sm:$0xff] }
 0x53f   :  { %698 = vmatpush.msra.mxu3 %v676_v46 }
 0x540   :  { %v559_v48 = vmul.f32 %v558_v47, %v558_v47 }
 0x542   :  { %v560_v4 = vsel %vm82_vm0, %v559_v48, 0.0 }
 0x543   :  { %561 = vadd.xlane.f32.xlu2 %v560_v4 }
 0x5b6   :  { %v562_v56 = vpop.xlane.xlu2 %561 }
 0x5b7   :  { %v563_v57 = vmul.f32 %v562_v56, %v1657_v44  ;;  %v1400_v56 = vld [vmem:[%s1911_s1 + $0x26] ss:$0 sm:$0xff] }
 0x5b9   :  { %v564_v59 = vadd.f32 1e-05, %v563_v57 }
 0x5bb   :  { %1428 = vrsqrt.f32 %v564_v59  ;;  %vm571_vm14 = vweird.f32 %v564_v59 }
 0x5c1   :  { %v1429_v61 = vpop.eup %1428 }
 0x5c2   :  { %v566_v62 = vmul.f32 %v1429_v61, %v564_v59  ;;  %vm572_vm13 = vweird.f32 %v1429_v61  ;;  %v1401_v59 = vld [vmem:[%s1911_s1 + $0x27] ss:$0 sm:$0xff] }
 0x5c3   :  { %vm573_vm15 = vmor %vm571_vm14, %vm572_vm13  ;;  %vm1267_vm14 = vcmask 8192  }
 0x5c4   :  { %v567_v0 = vmul.f32 %v1429_v61, %v566_v62  ;;  %v1402_v62 = vld [vmem:[%s1911_s1 + $0xc8] ss:$0 sm:$0xff] }
 0x5c6   :  { %v568_v1 = vmul.f32 0.5, %v567_v0 }
 0x5c8   :  { %v569_v2 = vsub.f32 1.5, %v568_v1 }
 0x5ca   :  { %v570_v5 = vmul.f32 %v1429_v61, %v569_v2 }
 0x5cc   :  { %v574_v7 = vsel %vm573_vm15, %v1429_v61, %v570_v5 }
 0x5cd   :  { %v575_v9 = vmul.f32 %v574_v7, %v558_v47  ;;  %v675_v47 = vld [vmem:[%s1911_s1 + $0xa8] sm:$0xff] }
 0x5ce   :  { %699 = vmatpush.msra.mxu3 %v675_v47 }
 0x5cf   :  { %v577_v13 = vmul.f32 %v1396_v6, %v575_v9 }
 0x5d1   :  { %v579_v17 = vadd.f32 %v1397_v10, %v577_v13 }
 0x5d3   :  { %1333 = vmatmul.msk.f32.vlgmr.msrb.gmra.mxu0 %vm82_vm0, %v579_v17 }
 0x650   :  { %v606_v23 = vpop.f32.mrf.mxu0 }
 0x651   :  { %v607_v26 = vadd.f32 %v1398_v22, %v606_v23 }
 0x653   :  { %vm609_vm2 = vcmp.ge.f32.partialorder %v607_v26, 0.0  ;;  %v610_v31 = vmul.f32 0.01, %v607_v26 }
 0x655   :  { %v611_v32 = vsel %vm609_vm2, %v607_v26, %v610_v31 }
 0x656   :  { %1334 = vmatmul.msk.f32.vlgmr.msra.gmra.mxu1 %vm622_vm3, %v611_v32 }
 0x6d3   :  { %v643_v34 = vpop.f32.mrf.mxu1 }
 0x6d4   :  { %v644_v35 = vadd.f32 %v1399_v33, %v643_v34 }
 0x6d6   :  { %v646_v36 = vadd.f32 %v644_v35, %v579_v17 }
 0x6d8   :  { %v649_v37 = vsel %vm82_vm0, %v646_v36, 0.0 }
 0x6d9   :  { %650 = vadd.xlane.f32.xlu1 %v649_v37 }
 0x74c   :  { %v651_v38 = vpop.xlane.xlu1 %650 }
 0x74d   :  { %v652_v39 = vmul.f32 %v651_v38, %v1657_v44 }
 0x74f   :  { %v653_v40 = vsub.f32 %v646_v36, %v652_v39 }
 0x751   :  { %v654_v41 = vmul.f32 %v653_v40, %v653_v40 }
 0x753   :  { %v655_v42 = vsel %vm82_vm0, %v654_v41, 0.0 }
 0x754   :  { %656 = vadd.xlane.f32.xlu1 %v655_v42 }
 0x7c7   :  { %v657_v48 = vpop.xlane.xlu1 %656 }
 0x7c8   :  { %v658_v4 = vmul.f32 %v657_v48, %v1657_v44 }
 0x7ca   :  { %v659_v49 = vadd.f32 1e-05, %v658_v4 }
 0x7cc   :  { %1430 = vrsqrt.f32 %v659_v49  ;;  %vm666_vm5 = vweird.f32 %v659_v49 }
 0x7d2   :  { %v1431_v50 = vpop.eup %1430 }
 0x7d3   :  { %v661_v51 = vmul.f32 %v1431_v50, %v659_v49  ;;  %vm667_vm4 = vweird.f32 %v1431_v50 }
 0x7d4   :  { %vm668_vm6 = vmor %vm666_vm5, %vm667_vm4 }
 0x7d5   :  { %v662_v52 = vmul.f32 %v1431_v50, %v661_v51 }
 0x7d7   :  { %v663_v53 = vmul.f32 0.5, %v662_v52 }
 0x7d9   :  { %v664_v54 = vsub.f32 1.5, %v663_v53 }
 0x7db   :  { %v665_v55 = vmul.f32 %v1431_v50, %v664_v54 }
 0x7dd   :  { %v669_v57 = vsel %vm668_vm6, %v1431_v50, %v665_v55 }
 0x7de   :  { %v670_v58 = vmul.f32 %v669_v57, %v653_v40 }
 0x7e0   :  { %v672_v60 = vmul.f32 %v1400_v56, %v670_v58 }
 0x7e2   :  { %v1734_v61 = vadd.f32 %v1401_v59, %v672_v60 }
 0x7e4   :  { %1335 = vmatmul.msk.f32.vlgmr.msra.gmra.mxu3 %vm82_vm0, %v1734_v61 }
 0x867   :  { %v701_v0 = vpop.f32.mrf.mxu3 }
 0x868   :  { %v702_v1 = vadd.f32 %v1402_v62, %v701_v0 }
 0x86a   :  { %802 = vrot.lane.b32.xlu2 %v702_v1, %s1482_s21  ;;  %705 = vrot.lane.b32.xlu0 %v702_v1, %s1484_s23 }
 0x86b   :  { %766 = vrot.lane.b32.xlu1 %v702_v1, %s1483_s22  ;;  %752 = vmatpush.msra.mxu2 %v702_v1 }
 0x86c   :  { %1339 = vmatmul.msk.f32.vlgmr.msra.gmra.mxu2 %vm110_vm1, %v1531_v12 }
 0x874   :  { %1340 = vmatmul.msk.f32.gmra.mxu2 %vm110_vm1, %v1536_v14 }
 0x87c   :  { %1341 = vmatmul.msk.f32.gmra.mxu2 %vm110_vm1, %v1541_v16 }
 0x884   :  { %1342 = vmatmul.msk.f32.gmra.mxu2 %vm110_vm1, %v1546_v18 }
 0x8c4   :  { %v803_v2 = vpop.permute.xlu2 %802 }
 0x8c5   :  { %820 = vmatpush.msrb.mxu1 %v803_v2 }
 0x8c6   :  { %821 = vmatmul.f32.vlgmr.msrb.gmra.mxu1 %v1485_v11 }
 0x8ce   :  { %824 = vmatmul.f32.gmra.mxu1 %v1485_v11 }
 0x8d6   :  { %827 = vmatmul.f32.gmra.mxu1 %v1485_v11 }
 0x8dc   :  { %v706_v5 = vpop.permute.xlu0 %705 }
 0x8dd   :  { %v767_v6 = vpop.permute.xlu1 %766  ;;  %723 = vmatpush.msra.mxu0 %v706_v5 }
 0x8de   :  { %784 = vmatpush.msrb.mxu3 %v767_v6  ;;  %724 = vmatmul.f32.vlgmr.msra.gmra.mxu0 %v1485_v11 }
 0x8df   :  { %785 = vmatmul.f32.vlgmr.msrb.gmra.mxu3 %v1485_v11  ;;  %1345 = vmatmul.msk.f32.gmra.mxu1 %vm110_vm1, %v1573_v29 }
 0x8e6   :  { %1336 = vmatmul.msk.f32.gmra.mxu0 %vm110_vm1, %v1556_v24 }
 0x8e7   :  { %788 = vmatmul.f32.gmra.mxu3 %v1485_v11 }
 0x8ee   :  { %1337 = vmatmul.msk.f32.gmra.mxu0 %vm110_vm1, %v1567_v27 }
 0x8ef   :  { %1343 = vmatmul.msk.f32.gmra.mxu3 %vm110_vm1, %v1559_v25  ;;  %v754_v12 = vpop.f32.mrf.mxu2 }
 0x8f6   :  { %1338 = vmatmul.msk.f32.gmra.mxu0 %vm110_vm1, %v1582_v30 }
 0x8f7   :  { %1344 = vmatmul.msk.f32.gmra.mxu3 %vm110_vm1, %v1570_v28  ;;  %v757_v29 = vpop.f32.mrf.mxu2 }
 0x8ff   :  { %v760_v25 = vpop.f32.mrf.mxu2 }
 0x907   :  { %v763_v21 = vpop.f32.mrf.mxu2 }
 0x943   :  { %v822_v16 = vpop.f32.mrf.mxu1 }
 0x94b   :  { %v825_v10 = vpop.f32.mrf.mxu1 }
 0x953   :  { %v828_v30 = vpop.f32.mrf.mxu1 }
 0x95b   :  { %v725_v14 = vpop.f32.mrf.mxu0 }
 0x95c   :  { %v755_v18 = vadd.f32 %v754_v12, %v725_v14  ;;  %v831_v31 = vpop.f32.mrf.mxu1 }
 0x962   :  { %v786_v24 = vpop.f32.mrf.mxu3 }
 0x963   :  { %v798_v7 = vadd.f32 %v786_v24, %v755_v18  ;;  %v728_v11 = vpop.f32.mrf.mxu0 }
 0x964   :  { %v758_v33 = vadd.f32 %v757_v29, %v728_v11 }
 0x965   :  { %v834_v9 = vadd.f32 %v822_v16, %v798_v7 }
 0x967   :  { %842 = vrot.lane.b32.xlu0 %v834_v9, %s1486_s24 }
 0x96a   :  { %v789_v27 = vpop.f32.mrf.mxu3 }
 0x96b   :  { %v731_v13 = vpop.f32.mrf.mxu0  ;;  %v799_v35 = vadd.f32 %v789_v27, %v758_v33  ;;  %v1040_v33 = vld [vmem:[%s1911_s1 + $0xe0] sm:$0xff] }
 0x96c   :  { %v761_v17 = vadd.f32 %v760_v25, %v731_v13  ;;  %v993_v25 = vld [vmem:[%s1911_s1 + $0xd8] sm:$0xff] }
 0x96d   :  { %v835_v36 = vadd.f32 %v825_v10, %v799_v35  ;;  %1012 = vmatpush.msra.mxu3 %v993_v25 }
 0x96f   :  { %v1389_v53 = vpack.i.bf16 %v834_v9, %v835_v36  ;;  %1059 = vmatpush.msrb.mxu3 %v1040_v33 }
 0x972   :  { %v792_v19 = vpop.f32.mrf.mxu3 }
 0x973   :  { %v800_v20 = vadd.f32 %v792_v19, %v761_v17  ;;  %v734_v28 = vpop.f32.mrf.mxu0 }
 0x974   :  { %v764_v23 = vadd.f32 %v763_v21, %v734_v28 }
 0x975   :  { %v836_v22 = vadd.f32 %v828_v30, %v800_v20 }
 0x977   :  { %846 = vrot.lane.b32.xlu1 %v836_v22, %s1486_s24 }
 0x97a   :  { %v795_v26 = vpop.f32.mrf.mxu3 }
 0x97b   :  { %v801_v32 = vadd.f32 %v795_v26, %v764_v23 }
 0x97d   :  { %v837_v34 = vadd.f32 %v831_v31, %v801_v32  ;;  %v992_v32 = vld [vmem:[%s1911_s1 + $0xd0] sm:$0xff] }
 0x97e   :  { %1035 = vmatpush.msra.mxu1 %v992_v32 }
 0x97f   :  { %848 = vrot.lane.b32.xlu1 %v837_v34, %s1486_s24  ;;  %v1384_v52 = vpack.i.bf16 %v836_v22, %v837_v34 }
 0x987   :  { %844 = vrot.lane.b32.xlu1 %v835_v36, %s1486_s24 }
 0x9d9   :  { %v843_v40 = vpop.permute.xlu0 %842 }
 0x9e9   :  { %v847_v37 = vpop.permute.xlu1 %846 }
 0x9f1   :  { %v849_v38 = vpop.permute.xlu1 %848 }
 0x9f2   :  { %1346 = vmatpush.xpose.msk.msrb.mxu0 %vm110_vm1, %v849_v38 }
 0x9f6   :  { %1347 = vmatpush.xpose.msk.msrb.mxu0 %vm110_vm1, %v847_v37 }
 0x9f9   :  { %v845_v39 = vpop.permute.xlu1 %844 }
 0x9fa   :  { %1348 = vmatpush.xpose.msk.msrb.mxu0 %vm110_vm1, %v845_v39 }
 0x9fe   :  { %1349 = vmatpush.xpose.msk.msrb.mxu0 %vm110_vm1, %v843_v40 }
 0xa01   :  { %1350 = vmatmul.msk.f32.vlgmr.msrb.gmra.mxu0 %vm110_vm1, %v834_v9 }
 0xa09   :  { %1351 = vmatmul.msk.f32.gmra.mxu0 %vm110_vm1, %v835_v36 }
 0xa11   :  { %1352 = vmatmul.msk.f32.gmra.mxu0 %vm110_vm1, %v836_v22 }
 0xa19   :  { %1353 = vmatmul.msk.f32.gmra.mxu0 %vm110_vm1, %v837_v34  ;;  %v1065_v34 = vld [vmem:[%s1911_s1 + $0xe8] sm:$0xff] }
 0xa1a   :  { %1084 = vmatpush.msrb.mxu1 %v1065_v34  ;;  %v1242_v34 = vld [vmem:[%s1911_s1 + $0x168] sm:$0xff] }
 0xa7e   :  { %v883_v41 = vpop.f32.mrf.mxu0 }
 0xa7f   :  { %v884_v42 = vadd.f32 %v883_v41, %v1601_v63 }
 0xa81   :  { %v895_v43 = vsel %vm82_vm0, %v884_v42, -inf }
 0xa82   :  { %896 = vmax.xlane.f32.xlu2 %v895_v43 }
 0xa86   :  { %v886_v45 = vpop.f32.mrf.mxu0 }
 0xa87   :  { %v887_v46 = vadd.f32 %v886_v45, %v1608_v3  ;;  %v1403_v45 = vld [vmem:[%s1911_s1 + $0xc9] ss:$0 sm:$0xff] }
 0xa89   :  { %v898_v47 = vsel %vm82_vm0, %v887_v46, -inf }
 0xa8a   :  { %899 = vmax.xlane.f32.xlu1 %v898_v47 }
 0xa8e   :  { %v889_v48 = vpop.f32.mrf.mxu0 }
 0xa8f   :  { %v890_v4 = vadd.f32 %v889_v48, %v1615_v8 }
 0xa91   :  { %v901_v49 = vsel %vm82_vm0, %v890_v4, -inf }
 0xa92   :  { %902 = vmax.xlane.f32.xlu0 %v901_v49 }
 0xa96   :  { %v892_v50 = vpop.f32.mrf.mxu0 }
 0xa97   :  { %v893_v51 = vadd.f32 %v892_v50, %v1622_v15 }
 0xa99   :  { %v904_v63 = vsel %vm82_vm0, %v893_v51, -inf }
 0xa9a   :  { %905 = vmax.xlane.f32.xlu2 %v904_v63 }
 0xaa6   :  { %1385 = vrot.lane.b32.xlu0 %v1384_v52, %s1487_s5 }
 0xab2   :  { %1390 = vrot.lane.b32.xlu2 %v1389_v53, %s1487_s5  ;;  %s1287_s5 = sshll.u32 %s1912_s2, 4  ;;  %s1288_s5 = int_to_ptr.hbm [resolvable:$true] %s1287_s5 }
 0xaf5   :  { %v897_v3 = vpop.xlane.xlu2 %896 }
 0xaf6   :  { %v907_v54 = vsub.f32 %v884_v42, %v897_v3  ;;  %v1125_v3 = vld [vmem:[%s1911_s1 + $0x108] sm:$0xff] }
 0xaf8   :  { %v911_v55 = vmul.f32 1.442695, %v907_v54  ;;  %v1123_v54 = vld [vmem:[%s1911_s1 + $0xf8] sm:$0xff] }
 0xafa   :  { %1432 = vpow2.f32 %v911_v55  ;;  %v1122_v55 = vld [vmem:[%s1911_s1 + $0xf0] sm:$0xff] }
 0xafd   :  { %v900_v8 = vpop.xlane.xlu1 %899 }
 0xafe   :  { %v908_v56 = vsub.f32 %v887_v46, %v900_v8  ;;  %v1161_v8 = vld [vmem:[%s1911_s1 + $0x148] sm:$0xff] }
 0xaff   :  { %1175 = vmatpush.msra.mxu0 %v1161_v8 }
 0xb00   :  { %v1433_v57 = vpop.eup %1432  ;;  %v913_v58 = vmul.f32 1.442695, %v908_v56  ;;  %v1160_v56 = vld [vmem:[%s1911_s1 + $0x140] sm:$0xff] }
 0xb01   :  { %v919_v59 = vsel %vm82_vm0, %v1433_v57, 0.0  ;;  %1176 = vmatpush.msra.mxu0 %v1160_v56 }
 0xb02   :  { %1434 = vpow2.f32 %v913_v58  ;;  %920 = vadd.xlane.f32.xlu1 %v919_v59 }
 0xb05   :  { %v903_v15 = vpop.xlane.xlu0 %902 }
 0xb06   :  { %v909_v60 = vsub.f32 %v890_v4, %v903_v15  ;;  %v1158_v15 = vld [vmem:[%s1911_s1 + $0x130] sm:$0xff] }
 0xb08   :  { %v1435_v62 = vpop.eup %1434  ;;  %v915_v0 = vmul.f32 1.442695, %v909_v60 }
 0xb09   :  { %v922_v1 = vsel %vm82_vm0, %v1435_v62, 0.0 }
 0xb0a   :  { %1436 = vpow2.f32 %v915_v0  ;;  %923 = vadd.xlane.f32.xlu1 %v922_v1 }
 0xb0d   :  { %v906_v2 = vpop.xlane.xlu2 %905 }
 0xb0e   :  { %v910_v5 = vsub.f32 %v893_v51, %v906_v2 }
 0xb10   :  { %v1437_v6 = vpop.eup %1436  ;;  %v917_v12 = vmul.f32 1.442695, %v910_v5 }
 0xb11   :  { %v925_v14 = vsel %vm82_vm0, %v1437_v6, 0.0 }
 0xb12   :  { %1438 = vpow2.f32 %v917_v12  ;;  %926 = vadd.xlane.f32.xlu1 %v925_v14  ;;  %v1404_v14 = vld [vmem:[%s1911_s1 + $0xca] ss:$0 sm:$0xff] }
 0xb15   :  { %v1391_v7 = vpop.permute.xlu2 %1390 }
 0xb16   :  { %v1392_v9 = vunpack.i.l.bf16 %v1391_v7  ;;  %v1393_v10 = vunpack.i.h.bf16 %v1391_v7 }
 0xb18   :  { %v1439_v16 = vpop.eup %1438  ;;  %v1386_v18 = vpop.permute.xlu0 %1385 }
 0xb19   :  { %v1387_v29 = vunpack.i.l.bf16 %v1386_v18  ;;  %v928_v24 = vsel %vm82_vm0, %v1439_v16, 0.0  ;;  %v1388_v11 = vunpack.i.h.bf16 %v1386_v18 }
 0xb1a   :  { %929 = vadd.xlane.f32.xlu0 %v928_v24 }
 0xb1b   :  { %975 = vmatpush.msrb.mxu2 %v1387_v29  ;;  %v1405_v29 = vld [vmem:[%s1911_s1 + $0xcb] ss:$0 sm:$0xff] }
 0xb1d   :  { %976 = vmatpush.msrb.mxu2 %v1388_v11  ;;  %v1156_v11 = vld [vmem:[%s1911_s1 + $0x120] sm:$0xff] }
 0xb1f   :  { %977 = vmatpush.msrb.mxu2 %v1392_v9  ;;  %v1155_v9 = vld [vmem:[%s1911_s1 + $0x118] sm:$0xff] }
 0xb21   :  { %978 = vmatpush.msrb.mxu2 %v1393_v10  ;;  %v1154_v10 = vld [vmem:[%s1911_s1 + $0x110] sm:$0xff] }
 0xb75   :  { %v921_v27 = vpop.xlane.xlu1 %920 }
 0xb76   :  { %1440 = vrcp.f32 %v921_v27  ;;  %v1406_v27 = vld [vmem:[%s1911_s1 + $0xcc] ss:$0 sm:$0xff] }
 0xb7c   :  { %v1441_v13 = vpop.eup %1440 }
 0xb7d   :  { %v935_v17 = vmul.f32 %v1441_v13, %v1433_v57  ;;  %v924_v30 = vpop.xlane.xlu1 %923  ;;  %v1159_v57 = vld [vmem:[%s1911_s1 + $0x138] sm:$0xff] }
 0xb7e   :  { %1442 = vrcp.f32 %v924_v30  ;;  %1177 = vmatpush.msra.mxu0 %v1159_v57 }
 0xb7f   :  { %1354 = vmatmul.msk.f32.vlgmr.msrb.gmra.mxu2 %vm82_vm0, %v935_v17 }
 0xb80   :  { %1178 = vmatpush.msra.mxu0 %v1158_v15 }
 0xb84   :  { %v1443_v19 = vpop.eup %1442 }
 0xb85   :  { %v927_v20 = vpop.xlane.xlu1 %926  ;;  %v936_v28 = vmul.f32 %v1443_v19, %v1435_v62  ;;  %v1157_v62 = vld [vmem:[%s1911_s1 + $0x128] sm:$0xff] }
 0xb86   :  { %1444 = vrcp.f32 %v927_v20  ;;  %1179 = vmatpush.msra.mxu0 %v1157_v62  ;;  %v1407_v19 = vld [vmem:[%s1911_s1 + $0xcd] ss:$0 sm:$0xff] }
 0xb87   :  { %1355 = vmatmul.msk.f32.gmra.mxu2 %vm82_vm0, %v936_v28 }
 0xb88   :  { %1180 = vmatpush.msra.mxu0 %v1156_v11 }
 0xb8a   :  { %1181 = vmatpush.msra.mxu0 %v1155_v9 }
 0xb8c   :  { %v1445_v21 = vpop.eup %1444  ;;  %1182 = vmatpush.msra.mxu0 %v1154_v10 }
 0xb8d   :  { %v930_v22 = vpop.xlane.xlu0 %929  ;;  %v937_v23 = vmul.f32 %v1445_v21, %v1437_v6 }
 0xb8e   :  { %1446 = vrcp.f32 %v930_v22 }
 0xb8f   :  { %1356 = vmatmul.msk.f32.gmra.mxu2 %vm82_vm0, %v937_v23 }
 0xb94   :  { %v1447_v26 = vpop.eup %1446 }
 0xb95   :  { %v938_v31 = vmul.f32 %v1447_v26, %v1439_v16 }
 0xb97   :  { %1357 = vmatmul.msk.f32.gmra.mxu2 %vm82_vm0, %v938_v31 }
 0xc02   :  { %v980_v35 = vpop.f32.mrf.mxu2 }
 0xc03   :  { %1359 = vmatmul.msk.f32.vlgmr.msra.gmra.mxu1 %vm110_vm1, %v980_v35  ;;  %v1241_v35 = vld [vmem:[%s1911_s1 + $0x160] sm:$0xff] }
 0xc0a   :  { %v983_v36 = vpop.f32.mrf.mxu2 }
 0xc0b   :  { %1358 = vmatmul.msk.f32.vlgmr.msra.gmra.mxu3 %vm110_vm1, %v983_v36 }
 0xc0c   :  { %1143 = vmatpush.msra.mxu3 %v1125_v3 }
 0xc12   :  { %v986_v37 = vpop.f32.mrf.mxu2 }
 0xc13   :  { %1360 = vmatmul.msk.f32.vlgmr.msrb.gmra.mxu3 %vm110_vm1, %v986_v37  ;;  %v1240_v37 = vld [vmem:[%s1911_s1 + $0x158] sm:$0xff] }
 0xc1a   :  { %v989_v38 = vpop.f32.mrf.mxu2 }
 0xc1b   :  { %1361 = vmatmul.msk.f32.vlgmr.msrb.gmra.mxu1 %vm110_vm1, %v989_v38 }
 0xc80   :  { %v1037_v40 = vpop.f32.mrf.mxu1 }
 0xc8e   :  { %v1014_v39 = vpop.f32.mrf.mxu3 }
 0xc8f   :  { %v1038_v41 = vadd.f32 %v1037_v40, %v1014_v39 }
 0xc96   :  { %v1061_v42 = vpop.f32.mrf.mxu3 }
 0xc97   :  { %v1064_v43 = vadd.f32 %v1061_v42, %v1038_v41 }
 0xc98   :  { %v1086_v46 = vpop.f32.mrf.mxu1 }
 0xc99   :  { %v1089_v47 = vadd.f32 %v1086_v46, %v1064_v43 }
 0xc9b   :  { %v1092_v48 = vadd.f32 %v1403_v45, %v1089_v47  ;;  %v1408_v47 = vld [vmem:[%s1911_s1 + $0xce] ss:$0 sm:$0xff] }
 0xc9d   :  { %v1093_v4 = vadd.f32 %v1092_v48, %v1734_v61  ;;  %v1124_v61 = vld [vmem:[%s1911_s1 + $0x100] sm:$0xff] }
 0xc9e   :  { %1144 = vmatpush.msra.mxu3 %v1124_v61 }
 0xc9f   :  { %v1096_v49 = vsel %vm82_vm0, %v1093_v4, 0.0 }
 0xca0   :  { %1097 = vadd.xlane.f32.xlu1 %v1096_v49  ;;  %1145 = vmatpush.msra.mxu3 %v1123_v54 }
 0xca2   :  { %1146 = vmatpush.msra.mxu3 %v1122_v55 }
 0xca4   :  { %1259 = vmatpush.msrb.mxu3 %v1242_v34 }
 0xca6   :  { %1260 = vmatpush.msrb.mxu3 %v1241_v35 }
 0xca8   :  { %1261 = vmatpush.msrb.mxu3 %v1240_v37 }
 0xd13   :  { %v1098_v50 = vpop.xlane.xlu1 %1097 }
 0xd14   :  { %v1099_v51 = vmul.f32 %v1098_v50, %v1657_v44 }
 0xd16   :  { %v1100_v63 = vsub.f32 %v1093_v4, %v1099_v51  ;;  %v17_v51 = vld [vmem:[%s1910_s0 + $0x28] sm:$0x1]  ;;  %s1489_s0 = smov [#allocation2]  }
 0xd17   :  { %s1285_s23 = sshll.u32 %s1489_s0, 4  ;;  %s1286_s23 = int_to_ptr.vmem [resolvable:$true] %s1285_s23 }
 0xd18   :  { %v1101_v52 = vmul.f32 %v1100_v63, %v1100_v63 }
 0xd1a   :  { %v1102_v53 = vsel %vm82_vm0, %v1101_v52, 0.0 }
 0xd1b   :  { %1103 = vadd.xlane.f32.xlu2 %v1102_v53  ;;  %v1243_v53 = vld [vmem:[%s1911_s1 + $0x170] sm:$0x1] }
 0xd8e   :  { %v1104_v58 = vpop.xlane.xlu2 %1103 }
 0xd8f   :  { %v1105_v59 = vmul.f32 %v1104_v58, %v1657_v44 }
 0xd91   :  { %v1106_v60 = vadd.f32 1e-05, %v1105_v59 }
 0xd93   :  { %1448 = vrsqrt.f32 %v1106_v60  ;;  %vm1113_vm8 = vweird.f32 %v1106_v60 }
 0xd99   :  { %v1449_v0 = vpop.eup %1448 }
 0xd9a   :  { %v1108_v1 = vmul.f32 %v1449_v0, %v1106_v60  ;;  %vm1114_vm7 = vweird.f32 %v1449_v0 }
 0xd9b   :  { %vm1115_vm9 = vmor %vm1113_vm8, %vm1114_vm7 }
 0xd9c   :  { %v1109_v2 = vmul.f32 %v1449_v0, %v1108_v1 }
 0xd9e   :  { %v1110_v5 = vmul.f32 0.5, %v1109_v2 }
 0xda0   :  { %v1111_v6 = vsub.f32 1.5, %v1110_v5 }
 0xda2   :  { %v1112_v12 = vmul.f32 %v1449_v0, %v1111_v6 }
 0xda4   :  { %v1116_v16 = vsel %vm1115_vm9, %v1449_v0, %v1112_v12 }
 0xda5   :  { %v1117_v18 = vmul.f32 %v1116_v16, %v1100_v63  ;;  %v1239_v63 = vld [vmem:[%s1911_s1 + $0x150] sm:$0xff] }
 0xda6   :  { %1262 = vmatpush.msrb.mxu3 %v1239_v63 }
 0xda7   :  { %v1119_v24 = vmul.f32 %v1404_v14, %v1117_v18 }
 0xda9   :  { %v1121_v7 = vadd.f32 %v1405_v29, %v1119_v24 }
 0xdab   :  { %1362 = vmatmul.msk.f32.vlgmr.msra.gmra.mxu3 %vm82_vm0, %v1121_v7 }
 0xe2e   :  { %v1148_v25 = vpop.f32.mrf.mxu3 }
 0xe2f   :  { %v1149_v13 = vadd.f32 %v1406_v27, %v1148_v25 }
 0xe31   :  { %vm1151_vm10 = vcmp.ge.f32.partialorder %v1149_v13, 0.0  ;;  %v1152_v17 = vmul.f32 0.01, %v1149_v13 }
 0xe33   :  { %v1153_v30 = vsel %vm1151_vm10, %v1149_v13, %v1152_v17 }
 0xe34   :  { %1363 = vmatmul.msk.f32.vlgmr.msra.gmra.mxu0 %vm622_vm3, %v1153_v30 }
 0xeb1   :  { %v1184_v20 = vpop.f32.mrf.mxu0 }
 0xeb2   :  { %v1185_v28 = vadd.f32 %v1407_v19, %v1184_v20 }
 0xeb4   :  { %v1187_v21 = vadd.f32 %v1185_v28, %v1121_v7 }
 0xeb6   :  { %v1190_v22 = vsel %vm82_vm0, %v1187_v21, 0.0 }
 0xeb7   :  { %1191 = vadd.xlane.f32.xlu1 %v1190_v22 }
 0xf2a   :  { %v1192_v23 = vpop.xlane.xlu1 %1191 }
 0xf2b   :  { %v1193_v26 = vmul.f32 %v1192_v23, %v1657_v44 }
 0xf2d   :  { %v1194_v31 = vsub.f32 %v1187_v21, %v1193_v26 }
 0xf2f   :  { %v1195_v32 = vmul.f32 %v1194_v31, %v1194_v31 }
 0xf31   :  { %v1196_v33 = vsel %vm82_vm0, %v1195_v32, 0.0 }
 0xf32   :  { %1197 = vadd.xlane.f32.xlu1 %v1196_v33 }
 0xfa5   :  { %v1198_v36 = vpop.xlane.xlu1 %1197 }
 0xfa6   :  { %v1199_v38 = vmul.f32 %v1198_v36, %v1657_v44  ;;  %v1409_v44 = vld [vmem:[%s1911_s1 + $0xcf] ss:$0 sm:$0xff] }
 0xfa8   :  { %v1200_v39 = vadd.f32 1e-05, %v1199_v38 }
 0xfaa   :  { %1450 = vrsqrt.f32 %v1200_v39  ;;  %vm1207_vm12 = vweird.f32 %v1200_v39 }
 0xfb0   :  { %v1451_v40 = vpop.eup %1450 }
 0xfb1   :  { %v1202_v41 = vmul.f32 %v1451_v40, %v1200_v39  ;;  %vm1208_vm11 = vweird.f32 %v1451_v40 }
 0xfb2   :  { %vm1209_vm13 = vmor %vm1207_vm12, %vm1208_vm11 }
 0xfb3   :  { %v1203_v42 = vmul.f32 %v1451_v40, %v1202_v41 }
 0xfb5   :  { %v1204_v43 = vmul.f32 0.5, %v1203_v42 }
 0xfb7   :  { %v1205_v45 = vsub.f32 1.5, %v1204_v43 }
 0xfb9   :  { %v1206_v46 = vmul.f32 %v1451_v40, %v1205_v45 }
 0xfbb   :  { %v1210_v48 = vsel %vm1209_vm13, %v1451_v40, %v1206_v46 }
 0xfbc   :  { %v1211_v4 = vmul.f32 %v1210_v48, %v1194_v31 }
 0xfbe   :  { %v1213_v49 = vmul.f32 %v1408_v47, %v1211_v4 }
 0xfc0   :  { %v1215_v50 = vadd.f32 %v1409_v44, %v1213_v49 }
 0xfc2   :  { %1234 = vmatpush.msra.mxu1 %v1215_v50 }
 0xfc3   :  { %1364 = vmatmul.msk.f32.vlgmr.msra.gmra.mxu1 %vm110_vm1, %v17_v51 }
0x1040   :  { %v1236_v52 = vpop.f32.mrf.mxu1 }
0x1041   :  { %1365 = vmatmul.msk.f32.vlgmr.msrb.gmra.mxu3 %vm82_vm0, %v1236_v52 }
0x10c4   :  { %v1264_v3 = vpop.f32.mrf.mxu3 }
0x10c5   :  { %v1265_v61 = vadd.f32 %v1264_v3, %v1243_v53 }
0x10c7   :  { %v1268_v54 = vsel %vm1267_vm14, %v1265_v61, -inf }
0x10c8   :  { %1269 = vmax.xlane.f32.xlu1 %v1268_v54 }
0x113b   :  { %v1270_v55 = vpop.xlane.xlu1 %1269 }
0x113c   :  { %v1271_v8 = vsub.f32 %v1265_v61, %v1270_v55 }
0x113e   :  { %v1272_v56 = vmul.f32 1.442695, %v1271_v8 }
0x1140   :  { %1452 = vpow2.f32 %v1272_v56 }
0x1146   :  { %v1453_v57 = vpop.eup %1452 }
0x1147   :  { %v1274_v58 = vsel %vm1267_vm14, %v1453_v57, 0.0 }
0x1148   :  { %1275 = vadd.xlane.f32.xlu1 %v1274_v58 }
0x11bb   :  { %v1276_v59 = vpop.xlane.xlu1 %1275 }
0x11bc   :  { %1454 = vrcp.f32 %v1276_v59 }
0x11c2   :  { %v1455_v15 = vpop.eup %1454 }
0x11c3   :  { %v1278_v60 = vmul.f32 %v1455_v15, %v1453_v57 }
0x11c5   :  { %1279 = vst.msk [vmem:[#allocation2] sm:$0x1] %vm1267_vm14, %v1278_v60 }
0x11c6   :  { %1290 = dma.vmem_to_hbm [thread:$0]  %s1286_s23, 16, %s1288_s5, [#allocation3]  }
0x11c7   :  { %1480 = dma.done.wait [#allocation3], 16  }
0x11c8   :  { %1481 = vsyncadd [#allocation3], 4294967280 }
0x11c9   :  { %1295 = vsyncpa [#allocation3], 1 }

</bundles_post_ra>
